<compile_context>
chip_gen: v6e
topology: v6e:2x2x1
jax: 0.10.0
libtpu: 0.0.40
codegen_flags: <defaults>
</compile_context>

<pallas_src>
import functools

import jax
import jax.numpy as jnp
from jax.experimental import pallas as pl
from jax.experimental.pallas import tpu as pltpu


def _conv_relu_fused(h, w_ref, b_ref, ksize, word_len):
    """Fused-tap 1-D conv + bias + ReLU on a flat activation slab.

    h:      (M, Cin) with M = block_b * word_len (words stacked along rows)
    w_ref:  (ksize * Cin, F) host-fused conv weight (row = k*Cin + cin)
    b_ref:  (1, F)
    Returns (M, F) float32.
    """
    M, C = h.shape
    P = (ksize - 1) // 2
    # position of each row inside its word (per-word "same" padding mask)
    pos = jax.lax.broadcasted_iota(jnp.int32, (M, 1), 0) % word_len

    taps = []
    for k in range(ksize):
        s = k - P  # tap k reads x[l + k - P]
        if s == 0:
            taps.append(h)
            continue
        z = jnp.zeros((abs(s), C), h.dtype)
        if s > 0:
            shifted = jnp.concatenate([h[s:, :], z], axis=0)
        else:
            shifted = jnp.concatenate([z, h[:s, :]], axis=0)
        valid = jnp.logical_and(pos + s >= 0, pos + s < word_len)
        taps.append(jnp.where(valid, shifted, 0))

    # im2col: lane-axis concat of shifted copies -> one MXU matmul per layer.
    t = jnp.concatenate(taps, axis=1)                      # (M, ksize*Cin)
    y = jnp.dot(t.astype(w_ref.dtype), w_ref[...],
                preferred_element_type=jnp.float32)        # (M, F) f32 acc
    return jnp.maximum(y + b_ref[...], 0.0)


def char_cnn_kernel(x_ref, w1_ref, b1_ref, w2_ref, b2_ref, w3_ref, b3_ref,
                    wfc_ref, bfc_ref, out_ref, s1, s2, s3, *, word_len):
    L = word_len
    L1, L2 = L // 2, L // 4
    M0 = x_ref.shape[0]          # block_b * L
    Bt = M0 // L                 # words per grid step
    M1, M2 = Bt * L1, Bt * L2

    # Dropout1d is identity at inference; not applied here.
    # TODO(synk): training-mode channel dropout (Dropout1d) not implemented.
    x = x_ref[...]                                               # (Bt*L, V)

    # ---- conv1: k=3, pad=1 -> ReLU -> MaxPool1d(2) ----
    s1[...] = _conv_relu_fused(x, w1_ref, b1_ref, 3, L)          # (Bt*L, F)
    h = jnp.maximum(s1[pl.ds(0, M1, 2), :], s1[pl.ds(1, M1, 2), :])   # (Bt*L1, F)

    # ---- conv2: k=5, pad=2 -> ReLU -> MaxPool1d(2) ----
    s2[...] = _conv_relu_fused(h, w2_ref, b2_ref, 5, L1)         # (Bt*L1, F)
    h = jnp.maximum(s2[pl.ds(0, M2, 2), :], s2[pl.ds(1, M2, 2), :])   # (Bt*L2, F)

    # ---- conv3: k=7, pad=3 -> ReLU -> AdaptiveMaxPool1d(1) ----
    s3[...] = _conv_relu_fused(h, w3_ref, b3_ref, 7, L2)         # (Bt*L2, F)
    pooled = s3[pl.ds(0, Bt, L2), :]                             # per-word max
    for j in range(1, L2):
        pooled = jnp.maximum(pooled, s3[pl.ds(j, Bt, L2), :])    # (Bt, F)

    # ---- fc: Linear(F -> E), batched over the whole block ----
    y = jnp.dot(pooled.astype(wfc_ref.dtype), wfc_ref[...],
                preferred_element_type=jnp.float32) + bfc_ref[...]    # (Bt, E)
    out_ref[...] = y[None].astype(out_ref.dtype)                 # (1, Bt, E)


def char_cnn_forward(x_blv, params, *, block_b=None, compute_dtype=jnp.float32):
    """x_blv: (B, L, V) float, channels-last.  Returns (B, E) embeddings.

    compute_dtype: set to jnp.bfloat16 on v6e/v7x for 2x MXU rate / half the
    weight+activation DMA bytes (accumulation stays f32).
    """
    w1, b1, w2, b2, w3, b3, wfc, bfc = params
    B, L, V = x_blv.shape
    F = w1.shape[2]
    E = wfc.shape[1]
    if L % 4 != 0:
        raise ValueError("max_word_length must be a multiple of 4 "
                         "(two MaxPool1d(2) stages).")
    if block_b is None:
        # >=2 grid steps when possible so both v7x TensorCores take half the batch.
        block_b = B // 2 if (B % 2 == 0 and B >= 2) else B
    if B % block_b != 0:
        raise ValueError("batch size must be divisible by block_b")
    grid_b = B // block_b
    L1, L2 = L // 2, L // 4

    # Host-side packing: fuse conv taps -> 2-D (K*Cin, Cout) weight slabs.
    cdt = compute_dtype
    w1f = w1.reshape(3 * V, F).astype(cdt)
    w2f = w2.reshape(5 * F, F).astype(cdt)
    w3f = w3.reshape(7 * F, F).astype(cdt)
    wfcc = wfc.astype(cdt)
    x_flat = x_blv.reshape(B * L, V).astype(cdt)   # words stacked along rows

    kernel = functools.partial(char_cnn_kernel, word_len=L)

    out = pl.pallas_call(
        kernel,
        out_shape=jax.ShapeDtypeStruct((grid_b, block_b, E), jnp.float32),
        grid_spec=pltpu.PrefetchScalarGridSpec(
            num_scalar_prefetch=0,
            grid=(grid_b,),
            in_specs=[
                pl.BlockSpec((block_b * L, V), lambda i: (i, 0)),  # x rows/step
                pl.BlockSpec((3 * V, F), lambda i: (0, 0)),        # w1 (resident)
                pl.BlockSpec((1, F),     lambda i: (0, 0)),        # b1
                pl.BlockSpec((5 * F, F), lambda i: (0, 0)),        # w2
                pl.BlockSpec((1, F),     lambda i: (0, 0)),        # b2
                pl.BlockSpec((7 * F, F), lambda i: (0, 0)),        # w3
                pl.BlockSpec((1, F),     lambda i: (0, 0)),        # b3
                pl.BlockSpec((F, E),     lambda i: (0, 0)),        # wfc
                pl.BlockSpec((1, E),     lambda i: (0, 0)),        # bfc
            ],
            out_specs=pl.BlockSpec((1, block_b, E), lambda i: (i, 0, 0)),
            scratch_shapes=[
                pltpu.VMEM((block_b * L,  F), jnp.float32),   # conv1 out (pooling)
                pltpu.VMEM((block_b * L1, F), jnp.float32),   # conv2 out (pooling)
                pltpu.VMEM((block_b * L2, F), jnp.float32),   # conv3 out (global max)
            ],
        ),
        compiler_params=pltpu.CompilerParams(
            dimension_semantics=("parallel",)),
    )(x_flat, w1f, b1, w2f, b2, w3f, b3, wfcc, bfc)
    return out.reshape(B, E)


def reference_forward(x_bvl, params):
    """Pure-JAX reference, PyTorch NCL layout: x_bvl is (B, V, L)."""
    w1, b1, w2, b2, w3, b3, wfc, bfc = params

    def conv1d(x, w_kio, b, pad):
        # x: (B, Cin, L); w_kio: (K, Cin, Cout) -> lax wants (Cout, Cin, K)
        w = jnp.transpose(w_kio, (2, 1, 0))
        y = jax.lax.conv_general_dilated(
            x, w, window_strides=(1,), padding=[(pad, pad)],
            dimension_numbers=("NCH", "OIH", "NCH"))
        return y + b.reshape(1, -1, 1)

    def maxpool2(x):
        return jax.lax.reduce_window(x, -jnp.inf, jax.lax.max,
                                     (1, 1, 2), (1, 1, 2), "VALID")

    h = jax.nn.relu(conv1d(x_bvl, w1, b1, 1))
    h = maxpool2(h)
    h = jax.nn.relu(conv1d(h, w2, b2, 2))
    h = maxpool2(h)
    h = jax.nn.relu(conv1d(h, w3, b3, 3))
    h = jnp.max(h, axis=-1)                      # AdaptiveMaxPool1d(1) + flatten
    return h @ wfc + bfc                         # Linear


if __name__ == "__main__":
    # Module hyperparameters (small, consistent with __init__)
    vocab = ["<UNK>"] + [chr(ord("a") + i) for i in range(15)]   # vocab_size V = 16
    V = len(vocab)
    L = 16      # max_word_length
    F = 32      # feature_size
    E = 32      # emb_size
    B = 8       # batch of words  (-> block_b=4, 2 grid steps)

    key = jax.random.PRNGKey(0)
    ks = jax.random.split(key, 10)

    # Deterministic synthetic parameters (conv weights stored as (K, Cin, Cout)).
    params = (
        0.2 * jax.random.normal(ks[0], (3, V, F), jnp.float32),   # w1
        0.05 * jax.random.normal(ks[1], (1, F), jnp.float32),     # b1
        0.2 * jax.random.normal(ks[2], (5, F, F), jnp.float32),   # w2
        0.05 * jax.random.normal(ks[3], (1, F), jnp.float32),     # b2
        0.2 * jax.random.normal(ks[4], (7, F, F), jnp.float32),   # w3
        0.05 * jax.random.normal(ks[5], (1, F), jnp.float32),     # b3
        0.2 * jax.random.normal(ks[6], (F, E), jnp.float32),      # wfc
        0.05 * jax.random.normal(ks[7], (1, E), jnp.float32),     # bfc
    )

    # Input in the PyTorch forward() layout: (B, vocab_size, max_word_length).
    x_pt = jax.random.normal(ks[8], (B, V, L), jnp.float32)
    # Kernel layout: channels-last (B, L, V).
    x_kernel = jnp.transpose(x_pt, (0, 2, 1))

    out = char_cnn_forward(x_kernel, params)
    out = jax.block_until_ready(out)
    assert out.shape == (B, E)

    ref = reference_forward(x_pt, params)
    max_err = float(jnp.max(jnp.abs(out - ref)))
    assert max_err < 1e-3, f"mismatch vs reference: {max_err}"

    print("KERNEL_OK")
</pallas_src>

<mosaic_0001>
module attributes {stable_mosaic.version = 11 : i64} {
  func.func @char_cnn_kernel(%arg0: i32, %arg1: memref<64x16xf32, #tpu.memory_space<vmem>>, %arg2: memref<48x32xf32, #tpu.memory_space<vmem>>, %arg3: memref<1x32xf32, #tpu.memory_space<vmem>>, %arg4: memref<160x32xf32, #tpu.memory_space<vmem>>, %arg5: memref<1x32xf32, #tpu.memory_space<vmem>>, %arg6: memref<224x32xf32, #tpu.memory_space<vmem>>, %arg7: memref<1x32xf32, #tpu.memory_space<vmem>>, %arg8: memref<32x32xf32, #tpu.memory_space<vmem>>, %arg9: memref<1x32xf32, #tpu.memory_space<vmem>>, %arg10: memref<1x4x32xf32, #tpu.memory_space<vmem>>, %arg11: memref<64x32xf32, #tpu.memory_space<vmem>>, %arg12: memref<32x32xf32, #tpu.memory_space<vmem>>, %arg13: memref<16x32xf32, #tpu.memory_space<vmem>>) attributes {dimension_semantics = [#tpu.dimension_semantics<parallel>], iteration_bounds = array<i64: 2>, scalar_prefetch = 0 : i64, scratch_operands = 3 : i64, tpu.core_type = #tpu.core_type<tc>, window_params = [{transform_indices = @transform_0, window_bounds = array<i64: 64, 16>}, {pipeline_mode = #tpu.pipeline_mode<synchronous>, transform_indices = @transform_1, window_bounds = array<i64: 48, 32>}, {pipeline_mode = #tpu.pipeline_mode<synchronous>, transform_indices = @transform_2, window_bounds = array<i64: 1, 32>}, {pipeline_mode = #tpu.pipeline_mode<synchronous>, transform_indices = @transform_3, window_bounds = array<i64: 160, 32>}, {pipeline_mode = #tpu.pipeline_mode<synchronous>, transform_indices = @transform_4, window_bounds = array<i64: 1, 32>}, {pipeline_mode = #tpu.pipeline_mode<synchronous>, transform_indices = @transform_5, window_bounds = array<i64: 224, 32>}, {pipeline_mode = #tpu.pipeline_mode<synchronous>, transform_indices = @transform_6, window_bounds = array<i64: 1, 32>}, {pipeline_mode = #tpu.pipeline_mode<synchronous>, transform_indices = @transform_7, window_bounds = array<i64: 32, 32>}, {pipeline_mode = #tpu.pipeline_mode<synchronous>, transform_indices = @transform_8, window_bounds = array<i64: 1, 32>}, {transform_indices = @transform_9, window_bounds = array<i64: 1, 4, 32>}]} {
    %c0 = arith.constant 0 : index
    %c0_0 = arith.constant 0 : index
    %0 = vector.load %arg1[%c0, %c0_0] : memref<64x16xf32, #tpu.memory_space<vmem>>, vector<64x16xf32>
    %1 = tpu.iota {dimensions = array<i32: 0>} : vector<64x1xi32>
    %c16_i32 = arith.constant 16 : i32
    %c0_i32 = arith.constant 0 : i32
    %2 = arith.cmpi eq, %c16_i32, %c0_i32 : i32
    %c1_i32 = arith.constant 1 : i32
    %3 = arith.select %2, %c1_i32, %c16_i32 : i32
    %4 = vector.broadcast %3 : i32 to vector<64x1xi32>
    %5 = arith.remsi %1, %4 : vector<64x1xi32>
    %c0_i32_1 = arith.constant 0 : i32
    %6 = vector.broadcast %c0_i32_1 : i32 to vector<64x1xi32>
    %7 = arith.cmpi ne, %5, %6 : vector<64x1xi32>
    %c0_i32_2 = arith.constant 0 : i32
    %8 = vector.broadcast %c0_i32_2 : i32 to vector<64x1xi32>
    %9 = arith.cmpi slt, %5, %8 : vector<64x1xi32>
    %c0_i32_3 = arith.constant 0 : i32
    %10 = arith.cmpi slt, %3, %c0_i32_3 : i32
    %11 = vector.broadcast %10 : i1 to vector<64x1xi1>
    %12 = vector.broadcast %11 : vector<64x1xi1> to vector<64x1xi1>
    %13 = arith.xori %9, %12 : vector<64x1xi1>
    %14 = arith.andi %13, %7 : vector<64x1xi1>
    %15 = vector.broadcast %3 : i32 to vector<64x1xi32>
    %16 = arith.addi %5, %15 : vector<64x1xi32>
    %17 = arith.select %14, %16, %5 : vector<64x1xi1>, vector<64x1xi32>
    %cst = arith.constant 0.000000e+00 : f32
    %18 = vector.broadcast %cst : f32 to vector<1x16xf32>
    %19 = vector.extract_strided_slice %0 {offsets = [0, 0], sizes = [63, 16], strides = [1, 1]} : vector<64x16xf32> to vector<63x16xf32>
    %20 = tpu.concatenate %18, %19 in 0 : vector<1x16xf32>, vector<63x16xf32> -> vector<64x16xf32>
    %c-1_i32 = arith.constant -1 : i32
    %21 = vector.broadcast %c-1_i32 : i32 to vector<64x1xi32>
    %22 = arith.addi %17, %21 : vector<64x1xi32>
    %c0_i32_4 = arith.constant 0 : i32
    %23 = vector.broadcast %c0_i32_4 : i32 to vector<64x1xi32>
    %24 = arith.cmpi sge, %22, %23 : vector<64x1xi32>
    %c-1_i32_5 = arith.constant -1 : i32
    %25 = vector.broadcast %c-1_i32_5 : i32 to vector<64x1xi32>
    %26 = arith.addi %17, %25 : vector<64x1xi32>
    %c16_i32_6 = arith.constant 16 : i32
    %27 = vector.broadcast %c16_i32_6 : i32 to vector<64x1xi32>
    %28 = arith.cmpi slt, %26, %27 : vector<64x1xi32>
    %29 = arith.andi %24, %28 : vector<64x1xi1>
    %c0_i32_7 = arith.constant 0 : i32
    %30 = arith.sitofp %c0_i32_7 : i32 to f32
    %31 = vector.shape_cast %29 : vector<64x1xi1> to vector<64x1xi1>
    %32 = vector.broadcast %31 : vector<64x1xi1> to vector<64x16xi1>
    %33 = vector.broadcast %30 : f32 to vector<64x16xf32>
    %34 = arith.select %32, %20, %33 : vector<64x16xi1>, vector<64x16xf32>
    %cst_8 = arith.constant 0.000000e+00 : f32
    %35 = vector.broadcast %cst_8 : f32 to vector<1x16xf32>
    %36 = vector.extract_strided_slice %0 {offsets = [1, 0], sizes = [63, 16], strides = [1, 1]} : vector<64x16xf32> to vector<63x16xf32>
    %37 = tpu.concatenate %36, %35 in 0 : vector<63x16xf32>, vector<1x16xf32> -> vector<64x16xf32>
    %c1_i32_9 = arith.constant 1 : i32
    %38 = vector.broadcast %c1_i32_9 : i32 to vector<64x1xi32>
    %39 = arith.addi %17, %38 : vector<64x1xi32>
    %c0_i32_10 = arith.constant 0 : i32
    %40 = vector.broadcast %c0_i32_10 : i32 to vector<64x1xi32>
    %41 = arith.cmpi sge, %39, %40 : vector<64x1xi32>
    %c1_i32_11 = arith.constant 1 : i32
    %42 = vector.broadcast %c1_i32_11 : i32 to vector<64x1xi32>
    %43 = arith.addi %17, %42 : vector<64x1xi32>
    %c16_i32_12 = arith.constant 16 : i32
    %44 = vector.broadcast %c16_i32_12 : i32 to vector<64x1xi32>
    %45 = arith.cmpi slt, %43, %44 : vector<64x1xi32>
    %46 = arith.andi %41, %45 : vector<64x1xi1>
    %c0_i32_13 = arith.constant 0 : i32
    %47 = arith.sitofp %c0_i32_13 : i32 to f32
    %48 = vector.shape_cast %46 : vector<64x1xi1> to vector<64x1xi1>
    %49 = vector.broadcast %48 : vector<64x1xi1> to vector<64x16xi1>
    %50 = vector.broadcast %47 : f32 to vector<64x16xf32>
    %51 = arith.select %49, %37, %50 : vector<64x16xi1>, vector<64x16xf32>
    %52 = tpu.concatenate %34, %0, %51 in 1 : vector<64x16xf32>, vector<64x16xf32>, vector<64x16xf32> -> vector<64x48xf32>
    %c0_14 = arith.constant 0 : index
    %c0_15 = arith.constant 0 : index
    %53 = vector.load %arg2[%c0_14, %c0_15] : memref<48x32xf32, #tpu.memory_space<vmem>>, vector<48x32xf32>
    %cst_16 = arith.constant dense<0.000000e+00> : vector<64x32xf32>
    %54 = tpu.matmul %52, %53, %cst_16 {dimension_numbers = #tpu.dot_dimension_numbers<[1], [0], [0], [1], [0, 0, 1, 1], [], []>} : vector<64x48xf32>, vector<48x32xf32>, vector<64x32xf32> -> vector<64x32xf32>
    %c0_17 = arith.constant 0 : index
    %c0_18 = arith.constant 0 : index
    %55 = vector.load %arg3[%c0_17, %c0_18] : memref<1x32xf32, #tpu.memory_space<vmem>>, vector<1x32xf32>
    %56 = vector.broadcast %55 : vector<1x32xf32> to vector<64x32xf32>
    %57 = arith.addf %54, %56 : vector<64x32xf32>
    %cst_19 = arith.constant 0.000000e+00 : f32
    %58 = vector.broadcast %cst_19 : f32 to vector<64x32xf32>
    %59 = arith.maximumf %57, %58 : vector<64x32xf32>
    %c0_20 = arith.constant 0 : index
    %c0_21 = arith.constant 0 : index
    %60 = vector.load %arg11[%c0_20, %c0_21] : memref<64x32xf32, #tpu.memory_space<vmem>>, vector<64x32xf32>
    tpu.vector_store %arg11[%c0_20, %c0_21], %59 {strides = array<i32>} : memref<64x32xf32, #tpu.memory_space<vmem>>, vector<64x32xf32>,
    %c0_22 = arith.constant 0 : index
    %c0_23 = arith.constant 0 : index
    %61 = tpu.strided_load %arg11[%c0_22, %c0_23] {strides = array<i32: 2, 1>} : memref<64x32xf32, #tpu.memory_space<vmem>>, vector<32x32xf32>
    %c1 = arith.constant 1 : index
    %c0_24 = arith.constant 0 : index
    %62 = tpu.strided_load %arg11[%c1, %c0_24] {strides = array<i32: 2, 1>} : memref<64x32xf32, #tpu.memory_space<vmem>>, vector<32x32xf32>
    %63 = arith.maximumf %61, %62 : vector<32x32xf32>
    %64 = tpu.iota {dimensions = array<i32: 0>} : vector<32x1xi32>
    %c8_i32 = arith.constant 8 : i32
    %c0_i32_25 = arith.constant 0 : i32
    %65 = arith.cmpi eq, %c8_i32, %c0_i32_25 : i32
    %c1_i32_26 = arith.constant 1 : i32
    %66 = arith.select %65, %c1_i32_26, %c8_i32 : i32
    %67 = vector.broadcast %66 : i32 to vector<32x1xi32>
    %68 = arith.remsi %64, %67 : vector<32x1xi32>
    %c0_i32_27 = arith.constant 0 : i32
    %69 = vector.broadcast %c0_i32_27 : i32 to vector<32x1xi32>
    %70 = arith.cmpi ne, %68, %69 : vector<32x1xi32>
    %c0_i32_28 = arith.constant 0 : i32
    %71 = vector.broadcast %c0_i32_28 : i32 to vector<32x1xi32>
    %72 = arith.cmpi slt, %68, %71 : vector<32x1xi32>
    %c0_i32_29 = arith.constant 0 : i32
    %73 = arith.cmpi slt, %66, %c0_i32_29 : i32
    %74 = vector.broadcast %73 : i1 to vector<32x1xi1>
    %75 = vector.broadcast %74 : vector<32x1xi1> to vector<32x1xi1>
    %76 = arith.xori %72, %75 : vector<32x1xi1>
    %77 = arith.andi %76, %70 : vector<32x1xi1>
    %78 = vector.broadcast %66 : i32 to vector<32x1xi32>
    %79 = arith.addi %68, %78 : vector<32x1xi32>
    %80 = arith.select %77, %79, %68 : vector<32x1xi1>, vector<32x1xi32>
    %cst_30 = arith.constant 0.000000e+00 : f32
    %81 = vector.broadcast %cst_30 : f32 to vector<2x32xf32>
    %82 = vector.extract_strided_slice %63 {offsets = [0, 0], sizes = [30, 32], strides = [1, 1]} : vector<32x32xf32> to vector<30x32xf32>
    %83 = tpu.concatenate %81, %82 in 0 : vector<2x32xf32>, vector<30x32xf32> -> vector<32x32xf32>
    %c-2_i32 = arith.constant -2 : i32
    %84 = vector.broadcast %c-2_i32 : i32 to vector<32x1xi32>
    %85 = arith.addi %80, %84 : vector<32x1xi32>
    %c0_i32_31 = arith.constant 0 : i32
    %86 = vector.broadcast %c0_i32_31 : i32 to vector<32x1xi32>
    %87 = arith.cmpi sge, %85, %86 : vector<32x1xi32>
    %c-2_i32_32 = arith.constant -2 : i32
    %88 = vector.broadcast %c-2_i32_32 : i32 to vector<32x1xi32>
    %89 = arith.addi %80, %88 : vector<32x1xi32>
    %c8_i32_33 = arith.constant 8 : i32
    %90 = vector.broadcast %c8_i32_33 : i32 to vector<32x1xi32>
    %91 = arith.cmpi slt, %89, %90 : vector<32x1xi32>
    %92 = arith.andi %87, %91 : vector<32x1xi1>
    %c0_i32_34 = arith.constant 0 : i32
    %93 = arith.sitofp %c0_i32_34 : i32 to f32
    %94 = vector.shape_cast %92 : vector<32x1xi1> to vector<32x1xi1>
    %95 = vector.broadcast %94 : vector<32x1xi1> to vector<32x32xi1>
    %96 = vector.broadcast %93 : f32 to vector<32x32xf32>
    %97 = arith.select %95, %83, %96 : vector<32x32xi1>, vector<32x32xf32>
    %cst_35 = arith.constant 0.000000e+00 : f32
    %98 = vector.broadcast %cst_35 : f32 to vector<1x32xf32>
    %99 = vector.extract_strided_slice %63 {offsets = [0, 0], sizes = [31, 32], strides = [1, 1]} : vector<32x32xf32> to vector<31x32xf32>
    %100 = tpu.concatenate %98, %99 in 0 : vector<1x32xf32>, vector<31x32xf32> -> vector<32x32xf32>
    %c-1_i32_36 = arith.constant -1 : i32
    %101 = vector.broadcast %c-1_i32_36 : i32 to vector<32x1xi32>
    %102 = arith.addi %80, %101 : vector<32x1xi32>
    %c0_i32_37 = arith.constant 0 : i32
    %103 = vector.broadcast %c0_i32_37 : i32 to vector<32x1xi32>
    %104 = arith.cmpi sge, %102, %103 : vector<32x1xi32>
    %c-1_i32_38 = arith.constant -1 : i32
    %105 = vector.broadcast %c-1_i32_38 : i32 to vector<32x1xi32>
    %106 = arith.addi %80, %105 : vector<32x1xi32>
    %c8_i32_39 = arith.constant 8 : i32
    %107 = vector.broadcast %c8_i32_39 : i32 to vector<32x1xi32>
    %108 = arith.cmpi slt, %106, %107 : vector<32x1xi32>
    %109 = arith.andi %104, %108 : vector<32x1xi1>
    %c0_i32_40 = arith.constant 0 : i32
    %110 = arith.sitofp %c0_i32_40 : i32 to f32
    %111 = vector.shape_cast %109 : vector<32x1xi1> to vector<32x1xi1>
    %112 = vector.broadcast %111 : vector<32x1xi1> to vector<32x32xi1>
    %113 = vector.broadcast %110 : f32 to vector<32x32xf32>
    %114 = arith.select %112, %100, %113 : vector<32x32xi1>, vector<32x32xf32>
    %cst_41 = arith.constant 0.000000e+00 : f32
    %115 = vector.broadcast %cst_41 : f32 to vector<1x32xf32>
    %116 = vector.extract_strided_slice %63 {offsets = [1, 0], sizes = [31, 32], strides = [1, 1]} : vector<32x32xf32> to vector<31x32xf32>
    %117 = tpu.concatenate %116, %115 in 0 : vector<31x32xf32>, vector<1x32xf32> -> vector<32x32xf32>
    %c1_i32_42 = arith.constant 1 : i32
    %118 = vector.broadcast %c1_i32_42 : i32 to vector<32x1xi32>
    %119 = arith.addi %80, %118 : vector<32x1xi32>
    %c0_i32_43 = arith.constant 0 : i32
    %120 = vector.broadcast %c0_i32_43 : i32 to vector<32x1xi32>
    %121 = arith.cmpi sge, %119, %120 : vector<32x1xi32>
    %c1_i32_44 = arith.constant 1 : i32
    %122 = vector.broadcast %c1_i32_44 : i32 to vector<32x1xi32>
    %123 = arith.addi %80, %122 : vector<32x1xi32>
    %c8_i32_45 = arith.constant 8 : i32
    %124 = vector.broadcast %c8_i32_45 : i32 to vector<32x1xi32>
    %125 = arith.cmpi slt, %123, %124 : vector<32x1xi32>
    %126 = arith.andi %121, %125 : vector<32x1xi1>
    %c0_i32_46 = arith.constant 0 : i32
    %127 = arith.sitofp %c0_i32_46 : i32 to f32
    %128 = vector.shape_cast %126 : vector<32x1xi1> to vector<32x1xi1>
    %129 = vector.broadcast %128 : vector<32x1xi1> to vector<32x32xi1>
    %130 = vector.broadcast %127 : f32 to vector<32x32xf32>
    %131 = arith.select %129, %117, %130 : vector<32x32xi1>, vector<32x32xf32>
    %cst_47 = arith.constant 0.000000e+00 : f32
    %132 = vector.broadcast %cst_47 : f32 to vector<2x32xf32>
    %133 = vector.extract_strided_slice %63 {offsets = [2, 0], sizes = [30, 32], strides = [1, 1]} : vector<32x32xf32> to vector<30x32xf32>
    %134 = tpu.concatenate %133, %132 in 0 : vector<30x32xf32>, vector<2x32xf32> -> vector<32x32xf32>
    %c2_i32 = arith.constant 2 : i32
    %135 = vector.broadcast %c2_i32 : i32 to vector<32x1xi32>
    %136 = arith.addi %80, %135 : vector<32x1xi32>
    %c0_i32_48 = arith.constant 0 : i32
    %137 = vector.broadcast %c0_i32_48 : i32 to vector<32x1xi32>
    %138 = arith.cmpi sge, %136, %137 : vector<32x1xi32>
    %c2_i32_49 = arith.constant 2 : i32
    %139 = vector.broadcast %c2_i32_49 : i32 to vector<32x1xi32>
    %140 = arith.addi %80, %139 : vector<32x1xi32>
    %c8_i32_50 = arith.constant 8 : i32
    %141 = vector.broadcast %c8_i32_50 : i32 to vector<32x1xi32>
    %142 = arith.cmpi slt, %140, %141 : vector<32x1xi32>
    %143 = arith.andi %138, %142 : vector<32x1xi1>
    %c0_i32_51 = arith.constant 0 : i32
    %144 = arith.sitofp %c0_i32_51 : i32 to f32
    %145 = vector.shape_cast %143 : vector<32x1xi1> to vector<32x1xi1>
    %146 = vector.broadcast %145 : vector<32x1xi1> to vector<32x32xi1>
    %147 = vector.broadcast %144 : f32 to vector<32x32xf32>
    %148 = arith.select %146, %134, %147 : vector<32x32xi1>, vector<32x32xf32>
    %149 = tpu.concatenate %97, %114, %63, %131, %148 in 1 : vector<32x32xf32>, vector<32x32xf32>, vector<32x32xf32>, vector<32x32xf32>, vector<32x32xf32> -> vector<32x160xf32>
    %c0_52 = arith.constant 0 : index
    %c0_53 = arith.constant 0 : index
    %150 = vector.load %arg4[%c0_52, %c0_53] : memref<160x32xf32, #tpu.memory_space<vmem>>, vector<160x32xf32>
    %cst_54 = arith.constant dense<0.000000e+00> : vector<32x32xf32>
    %151 = tpu.matmul %149, %150, %cst_54 {dimension_numbers = #tpu.dot_dimension_numbers<[1], [0], [0], [1], [0, 0, 1, 1], [], []>} : vector<32x160xf32>, vector<160x32xf32>, vector<32x32xf32> -> vector<32x32xf32>
    %c0_55 = arith.constant 0 : index
    %c0_56 = arith.constant 0 : index
    %152 = vector.load %arg5[%c0_55, %c0_56] : memref<1x32xf32, #tpu.memory_space<vmem>>, vector<1x32xf32>
    %153 = vector.broadcast %152 : vector<1x32xf32> to vector<32x32xf32>
    %154 = arith.addf %151, %153 : vector<32x32xf32>
    %cst_57 = arith.constant 0.000000e+00 : f32
    %155 = vector.broadcast %cst_57 : f32 to vector<32x32xf32>
    %156 = arith.maximumf %154, %155 : vector<32x32xf32>
    %c0_58 = arith.constant 0 : index
    %c0_59 = arith.constant 0 : index
    %157 = vector.load %arg12[%c0_58, %c0_59] : memref<32x32xf32, #tpu.memory_space<vmem>>, vector<32x32xf32>
    tpu.vector_store %arg12[%c0_58, %c0_59], %156 {strides = array<i32>} : memref<32x32xf32, #tpu.memory_space<vmem>>, vector<32x32xf32>,
    %c0_60 = arith.constant 0 : index
    %c0_61 = arith.constant 0 : index
    %158 = tpu.strided_load %arg12[%c0_60, %c0_61] {strides = array<i32: 2, 1>} : memref<32x32xf32, #tpu.memory_space<vmem>>, vector<16x32xf32>
    %c1_62 = arith.constant 1 : index
    %c0_63 = arith.constant 0 : index
    %159 = tpu.strided_load %arg12[%c1_62, %c0_63] {strides = array<i32: 2, 1>} : memref<32x32xf32, #tpu.memory_space<vmem>>, vector<16x32xf32>
    %160 = arith.maximumf %158, %159 : vector<16x32xf32>
    %161 = tpu.iota {dimensions = array<i32: 0>} : vector<16x1xi32>
    %c4_i32 = arith.constant 4 : i32
    %c0_i32_64 = arith.constant 0 : i32
    %162 = arith.cmpi eq, %c4_i32, %c0_i32_64 : i32
    %c1_i32_65 = arith.constant 1 : i32
    %163 = arith.select %162, %c1_i32_65, %c4_i32 : i32
    %164 = vector.broadcast %163 : i32 to vector<16x1xi32>
    %165 = arith.remsi %161, %164 : vector<16x1xi32>
    %c0_i32_66 = arith.constant 0 : i32
    %166 = vector.broadcast %c0_i32_66 : i32 to vector<16x1xi32>
    %167 = arith.cmpi ne, %165, %166 : vector<16x1xi32>
    %c0_i32_67 = arith.constant 0 : i32
    %168 = vector.broadcast %c0_i32_67 : i32 to vector<16x1xi32>
    %169 = arith.cmpi slt, %165, %168 : vector<16x1xi32>
    %c0_i32_68 = arith.constant 0 : i32
    %170 = arith.cmpi slt, %163, %c0_i32_68 : i32
    %171 = vector.broadcast %170 : i1 to vector<16x1xi1>
    %172 = vector.broadcast %171 : vector<16x1xi1> to vector<16x1xi1>
    %173 = arith.xori %169, %172 : vector<16x1xi1>
    %174 = arith.andi %173, %167 : vector<16x1xi1>
    %175 = vector.broadcast %163 : i32 to vector<16x1xi32>
    %176 = arith.addi %165, %175 : vector<16x1xi32>
    %177 = arith.select %174, %176, %165 : vector<16x1xi1>, vector<16x1xi32>
    %cst_69 = arith.constant 0.000000e+00 : f32
    %178 = vector.broadcast %cst_69 : f32 to vector<3x32xf32>
    %179 = vector.extract_strided_slice %160 {offsets = [0, 0], sizes = [13, 32], strides = [1, 1]} : vector<16x32xf32> to vector<13x32xf32>
    %180 = tpu.concatenate %178, %179 in 0 : vector<3x32xf32>, vector<13x32xf32> -> vector<16x32xf32>
    %c-3_i32 = arith.constant -3 : i32
    %181 = vector.broadcast %c-3_i32 : i32 to vector<16x1xi32>
    %182 = arith.addi %177, %181 : vector<16x1xi32>
    %c0_i32_70 = arith.constant 0 : i32
    %183 = vector.broadcast %c0_i32_70 : i32 to vector<16x1xi32>
    %184 = arith.cmpi sge, %182, %183 : vector<16x1xi32>
    %c-3_i32_71 = arith.constant -3 : i32
    %185 = vector.broadcast %c-3_i32_71 : i32 to vector<16x1xi32>
    %186 = arith.addi %177, %185 : vector<16x1xi32>
    %c4_i32_72 = arith.constant 4 : i32
    %187 = vector.broadcast %c4_i32_72 : i32 to vector<16x1xi32>
    %188 = arith.cmpi slt, %186, %187 : vector<16x1xi32>
    %189 = arith.andi %184, %188 : vector<16x1xi1>
    %c0_i32_73 = arith.constant 0 : i32
    %190 = arith.sitofp %c0_i32_73 : i32 to f32
    %191 = vector.shape_cast %189 : vector<16x1xi1> to vector<16x1xi1>
    %192 = vector.broadcast %191 : vector<16x1xi1> to vector<16x32xi1>
    %193 = vector.broadcast %190 : f32 to vector<16x32xf32>
    %194 = arith.select %192, %180, %193 : vector<16x32xi1>, vector<16x32xf32>
    %cst_74 = arith.constant 0.000000e+00 : f32
    %195 = vector.broadcast %cst_74 : f32 to vector<2x32xf32>
    %196 = vector.extract_strided_slice %160 {offsets = [0, 0], sizes = [14, 32], strides = [1, 1]} : vector<16x32xf32> to vector<14x32xf32>
    %197 = tpu.concatenate %195, %196 in 0 : vector<2x32xf32>, vector<14x32xf32> -> vector<16x32xf32>
    %c-2_i32_75 = arith.constant -2 : i32
    %198 = vector.broadcast %c-2_i32_75 : i32 to vector<16x1xi32>
    %199 = arith.addi %177, %198 : vector<16x1xi32>
    %c0_i32_76 = arith.constant 0 : i32
    %200 = vector.broadcast %c0_i32_76 : i32 to vector<16x1xi32>
    %201 = arith.cmpi sge, %199, %200 : vector<16x1xi32>
    %c-2_i32_77 = arith.constant -2 : i32
    %202 = vector.broadcast %c-2_i32_77 : i32 to vector<16x1xi32>
    %203 = arith.addi %177, %202 : vector<16x1xi32>
    %c4_i32_78 = arith.constant 4 : i32
    %204 = vector.broadcast %c4_i32_78 : i32 to vector<16x1xi32>
    %205 = arith.cmpi slt, %203, %204 : vector<16x1xi32>
    %206 = arith.andi %201, %205 : vector<16x1xi1>
    %c0_i32_79 = arith.constant 0 : i32
    %207 = arith.sitofp %c0_i32_79 : i32 to f32
    %208 = vector.shape_cast %206 : vector<16x1xi1> to vector<16x1xi1>
    %209 = vector.broadcast %208 : vector<16x1xi1> to vector<16x32xi1>
    %210 = vector.broadcast %207 : f32 to vector<16x32xf32>
    %211 = arith.select %209, %197, %210 : vector<16x32xi1>, vector<16x32xf32>
    %cst_80 = arith.constant 0.000000e+00 : f32
    %212 = vector.broadcast %cst_80 : f32 to vector<1x32xf32>
    %213 = vector.extract_strided_slice %160 {offsets = [0, 0], sizes = [15, 32], strides = [1, 1]} : vector<16x32xf32> to vector<15x32xf32>
    %214 = tpu.concatenate %212, %213 in 0 : vector<1x32xf32>, vector<15x32xf32> -> vector<16x32xf32>
    %c-1_i32_81 = arith.constant -1 : i32
    %215 = vector.broadcast %c-1_i32_81 : i32 to vector<16x1xi32>
    %216 = arith.addi %177, %215 : vector<16x1xi32>
    %c0_i32_82 = arith.constant 0 : i32
    %217 = vector.broadcast %c0_i32_82 : i32 to vector<16x1xi32>
    %218 = arith.cmpi sge, %216, %217 : vector<16x1xi32>
    %c-1_i32_83 = arith.constant -1 : i32
    %219 = vector.broadcast %c-1_i32_83 : i32 to vector<16x1xi32>
    %220 = arith.addi %177, %219 : vector<16x1xi32>
    %c4_i32_84 = arith.constant 4 : i32
    %221 = vector.broadcast %c4_i32_84 : i32 to vector<16x1xi32>
    %222 = arith.cmpi slt, %220, %221 : vector<16x1xi32>
    %223 = arith.andi %218, %222 : vector<16x1xi1>
    %c0_i32_85 = arith.constant 0 : i32
    %224 = arith.sitofp %c0_i32_85 : i32 to f32
    %225 = vector.shape_cast %223 : vector<16x1xi1> to vector<16x1xi1>
    %226 = vector.broadcast %225 : vector<16x1xi1> to vector<16x32xi1>
    %227 = vector.broadcast %224 : f32 to vector<16x32xf32>
    %228 = arith.select %226, %214, %227 : vector<16x32xi1>, vector<16x32xf32>
    %cst_86 = arith.constant 0.000000e+00 : f32
    %229 = vector.broadcast %cst_86 : f32 to vector<1x32xf32>
    %230 = vector.extract_strided_slice %160 {offsets = [1, 0], sizes = [15, 32], strides = [1, 1]} : vector<16x32xf32> to vector<15x32xf32>
    %231 = tpu.concatenate %230, %229 in 0 : vector<15x32xf32>, vector<1x32xf32> -> vector<16x32xf32>
    %c1_i32_87 = arith.constant 1 : i32
    %232 = vector.broadcast %c1_i32_87 : i32 to vector<16x1xi32>
    %233 = arith.addi %177, %232 : vector<16x1xi32>
    %c0_i32_88 = arith.constant 0 : i32
    %234 = vector.broadcast %c0_i32_88 : i32 to vector<16x1xi32>
    %235 = arith.cmpi sge, %233, %234 : vector<16x1xi32>
    %c1_i32_89 = arith.constant 1 : i32
    %236 = vector.broadcast %c1_i32_89 : i32 to vector<16x1xi32>
    %237 = arith.addi %177, %236 : vector<16x1xi32>
    %c4_i32_90 = arith.constant 4 : i32
    %238 = vector.broadcast %c4_i32_90 : i32 to vector<16x1xi32>
    %239 = arith.cmpi slt, %237, %238 : vector<16x1xi32>
    %240 = arith.andi %235, %239 : vector<16x1xi1>
    %c0_i32_91 = arith.constant 0 : i32
    %241 = arith.sitofp %c0_i32_91 : i32 to f32
    %242 = vector.shape_cast %240 : vector<16x1xi1> to vector<16x1xi1>
    %243 = vector.broadcast %242 : vector<16x1xi1> to vector<16x32xi1>
    %244 = vector.broadcast %241 : f32 to vector<16x32xf32>
    %245 = arith.select %243, %231, %244 : vector<16x32xi1>, vector<16x32xf32>
    %cst_92 = arith.constant 0.000000e+00 : f32
    %246 = vector.broadcast %cst_92 : f32 to vector<2x32xf32>
    %247 = vector.extract_strided_slice %160 {offsets = [2, 0], sizes = [14, 32], strides = [1, 1]} : vector<16x32xf32> to vector<14x32xf32>
    %248 = tpu.concatenate %247, %246 in 0 : vector<14x32xf32>, vector<2x32xf32> -> vector<16x32xf32>
    %c2_i32_93 = arith.constant 2 : i32
    %249 = vector.broadcast %c2_i32_93 : i32 to vector<16x1xi32>
    %250 = arith.addi %177, %249 : vector<16x1xi32>
    %c0_i32_94 = arith.constant 0 : i32
    %251 = vector.broadcast %c0_i32_94 : i32 to vector<16x1xi32>
    %252 = arith.cmpi sge, %250, %251 : vector<16x1xi32>
    %c2_i32_95 = arith.constant 2 : i32
    %253 = vector.broadcast %c2_i32_95 : i32 to vector<16x1xi32>
    %254 = arith.addi %177, %253 : vector<16x1xi32>
    %c4_i32_96 = arith.constant 4 : i32
    %255 = vector.broadcast %c4_i32_96 : i32 to vector<16x1xi32>
    %256 = arith.cmpi slt, %254, %255 : vector<16x1xi32>
    %257 = arith.andi %252, %256 : vector<16x1xi1>
    %c0_i32_97 = arith.constant 0 : i32
    %258 = arith.sitofp %c0_i32_97 : i32 to f32
    %259 = vector.shape_cast %257 : vector<16x1xi1> to vector<16x1xi1>
    %260 = vector.broadcast %259 : vector<16x1xi1> to vector<16x32xi1>
    %261 = vector.broadcast %258 : f32 to vector<16x32xf32>
    %262 = arith.select %260, %248, %261 : vector<16x32xi1>, vector<16x32xf32>
    %cst_98 = arith.constant 0.000000e+00 : f32
    %263 = vector.broadcast %cst_98 : f32 to vector<3x32xf32>
    %264 = vector.extract_strided_slice %160 {offsets = [3, 0], sizes = [13, 32], strides = [1, 1]} : vector<16x32xf32> to vector<13x32xf32>
    %265 = tpu.concatenate %264, %263 in 0 : vector<13x32xf32>, vector<3x32xf32> -> vector<16x32xf32>
    %c3_i32 = arith.constant 3 : i32
    %266 = vector.broadcast %c3_i32 : i32 to vector<16x1xi32>
    %267 = arith.addi %177, %266 : vector<16x1xi32>
    %c0_i32_99 = arith.constant 0 : i32
    %268 = vector.broadcast %c0_i32_99 : i32 to vector<16x1xi32>
    %269 = arith.cmpi sge, %267, %268 : vector<16x1xi32>
    %c3_i32_100 = arith.constant 3 : i32
    %270 = vector.broadcast %c3_i32_100 : i32 to vector<16x1xi32>
    %271 = arith.addi %177, %270 : vector<16x1xi32>
    %c4_i32_101 = arith.constant 4 : i32
    %272 = vector.broadcast %c4_i32_101 : i32 to vector<16x1xi32>
    %273 = arith.cmpi slt, %271, %272 : vector<16x1xi32>
    %274 = arith.andi %269, %273 : vector<16x1xi1>
    %c0_i32_102 = arith.constant 0 : i32
    %275 = arith.sitofp %c0_i32_102 : i32 to f32
    %276 = vector.shape_cast %274 : vector<16x1xi1> to vector<16x1xi1>
    %277 = vector.broadcast %276 : vector<16x1xi1> to vector<16x32xi1>
    %278 = vector.broadcast %275 : f32 to vector<16x32xf32>
    %279 = arith.select %277, %265, %278 : vector<16x32xi1>, vector<16x32xf32>
    %280 = tpu.concatenate %194, %211, %228, %160, %245, %262, %279 in 1 : vector<16x32xf32>, vector<16x32xf32>, vector<16x32xf32>, vector<16x32xf32>, vector<16x32xf32>, vector<16x32xf32>, vector<16x32xf32> -> vector<16x224xf32>
    %c0_103 = arith.constant 0 : index
    %c0_104 = arith.constant 0 : index
    %281 = vector.load %arg6[%c0_103, %c0_104] : memref<224x32xf32, #tpu.memory_space<vmem>>, vector<224x32xf32>
    %cst_105 = arith.constant dense<0.000000e+00> : vector<16x32xf32>
    %282 = tpu.matmul %280, %281, %cst_105 {dimension_numbers = #tpu.dot_dimension_numbers<[1], [0], [0], [1], [0, 0, 1, 1], [], []>} : vector<16x224xf32>, vector<224x32xf32>, vector<16x32xf32> -> vector<16x32xf32>
    %c0_106 = arith.constant 0 : index
    %c0_107 = arith.constant 0 : index
    %283 = vector.load %arg7[%c0_106, %c0_107] : memref<1x32xf32, #tpu.memory_space<vmem>>, vector<1x32xf32>
    %284 = vector.broadcast %283 : vector<1x32xf32> to vector<16x32xf32>
    %285 = arith.addf %282, %284 : vector<16x32xf32>
    %cst_108 = arith.constant 0.000000e+00 : f32
    %286 = vector.broadcast %cst_108 : f32 to vector<16x32xf32>
    %287 = arith.maximumf %285, %286 : vector<16x32xf32>
    %c0_109 = arith.constant 0 : index
    %c0_110 = arith.constant 0 : index
    %288 = vector.load %arg13[%c0_109, %c0_110] : memref<16x32xf32, #tpu.memory_space<vmem>>, vector<16x32xf32>
    tpu.vector_store %arg13[%c0_109, %c0_110], %287 {strides = array<i32>} : memref<16x32xf32, #tpu.memory_space<vmem>>, vector<16x32xf32>,
    %c0_111 = arith.constant 0 : index
    %c0_112 = arith.constant 0 : index
    %289 = tpu.strided_load %arg13[%c0_111, %c0_112] {strides = array<i32: 4, 1>} : memref<16x32xf32, #tpu.memory_space<vmem>>, vector<4x32xf32>
    %c1_113 = arith.constant 1 : index
    %c0_114 = arith.constant 0 : index
    %290 = tpu.strided_load %arg13[%c1_113, %c0_114] {strides = array<i32: 4, 1>} : memref<16x32xf32, #tpu.memory_space<vmem>>, vector<4x32xf32>
    %291 = arith.maximumf %289, %290 : vector<4x32xf32>
    %c2 = arith.constant 2 : index
    %c0_115 = arith.constant 0 : index
    %292 = tpu.strided_load %arg13[%c2, %c0_115] {strides = array<i32: 4, 1>} : memref<16x32xf32, #tpu.memory_space<vmem>>, vector<4x32xf32>
    %293 = arith.maximumf %291, %292 : vector<4x32xf32>
    %c3 = arith.constant 3 : index
    %c0_116 = arith.constant 0 : index
    %294 = tpu.strided_load %arg13[%c3, %c0_116] {strides = array<i32: 4, 1>} : memref<16x32xf32, #tpu.memory_space<vmem>>, vector<4x32xf32>
    %295 = arith.maximumf %293, %294 : vector<4x32xf32>
    %c0_117 = arith.constant 0 : index
    %c0_118 = arith.constant 0 : index
    %296 = vector.load %arg8[%c0_117, %c0_118] : memref<32x32xf32, #tpu.memory_space<vmem>>, vector<32x32xf32>
    %cst_119 = arith.constant dense<0.000000e+00> : vector<4x32xf32>
    %297 = tpu.matmul %295, %296, %cst_119 {dimension_numbers = #tpu.dot_dimension_numbers<[1], [0], [0], [1], [0, 0, 1, 1], [], []>} : vector<4x32xf32>, vector<32x32xf32>, vector<4x32xf32> -> vector<4x32xf32>
    %c0_120 = arith.constant 0 : index
    %c0_121 = arith.constant 0 : index
    %298 = vector.load %arg9[%c0_120, %c0_121] : memref<1x32xf32, #tpu.memory_space<vmem>>, vector<1x32xf32>
    %299 = vector.broadcast %298 : vector<1x32xf32> to vector<4x32xf32>
    %300 = arith.addf %297, %299 : vector<4x32xf32>
    %301 = vector.shape_cast %300 : vector<4x32xf32> to vector<1x4x32xf32>
    %c0_122 = arith.constant 0 : index
    %c0_123 = arith.constant 0 : index
    %c0_124 = arith.constant 0 : index
    %302 = vector.load %arg10[%c0_122, %c0_123, %c0_124] : memref<1x4x32xf32, #tpu.memory_space<vmem>>, vector<1x4x32xf32>
    tpu.vector_store %arg10[%c0_122, %c0_123, %c0_124], %301 {strides = array<i32>} : memref<1x4x32xf32, #tpu.memory_space<vmem>>, vector<1x4x32xf32>,
    return
  }
  func.func @transform_0(%arg0: i32) -> (i32, i32) {
    %c0_i32 = arith.constant 0 : i32
    %c0_i32_0 = arith.constant 0 : i32
    return %arg0, %c0_i32 : i32, i32
  }
  func.func @transform_1(%arg0: i32) -> (i32, i32) {
    %c0_i32 = arith.constant 0 : i32
    %c0_i32_0 = arith.constant 0 : i32
    %c0_i32_1 = arith.constant 0 : i32
    return %c0_i32, %c0_i32_0 : i32, i32
  }
  func.func @transform_2(%arg0: i32) -> (i32, i32) {
    %c0_i32 = arith.constant 0 : i32
    %c0_i32_0 = arith.constant 0 : i32
    %c0_i32_1 = arith.constant 0 : i32
    return %c0_i32, %c0_i32_0 : i32, i32
  }
  func.func @transform_3(%arg0: i32) -> (i32, i32) {
    %c0_i32 = arith.constant 0 : i32
    %c0_i32_0 = arith.constant 0 : i32
    %c0_i32_1 = arith.constant 0 : i32
    return %c0_i32, %c0_i32_0 : i32, i32
  }
  func.func @transform_4(%arg0: i32) -> (i32, i32) {
    %c0_i32 = arith.constant 0 : i32
    %c0_i32_0 = arith.constant 0 : i32
    %c0_i32_1 = arith.constant 0 : i32
    return %c0_i32, %c0_i32_0 : i32, i32
  }
  func.func @transform_5(%arg0: i32) -> (i32, i32) {
    %c0_i32 = arith.constant 0 : i32
    %c0_i32_0 = arith.constant 0 : i32
    %c0_i32_1 = arith.constant 0 : i32
    return %c0_i32, %c0_i32_0 : i32, i32
  }
  func.func @transform_6(%arg0: i32) -> (i32, i32) {
    %c0_i32 = arith.constant 0 : i32
    %c0_i32_0 = arith.constant 0 : i32
    %c0_i32_1 = arith.constant 0 : i32
    return %c0_i32, %c0_i32_0 : i32, i32
  }
  func.func @transform_7(%arg0: i32) -> (i32, i32) {
    %c0_i32 = arith.constant 0 : i32
    %c0_i32_0 = arith.constant 0 : i32
    %c0_i32_1 = arith.constant 0 : i32
    return %c0_i32, %c0_i32_0 : i32, i32
  }
  func.func @transform_8(%arg0: i32) -> (i32, i32) {
    %c0_i32 = arith.constant 0 : i32
    %c0_i32_0 = arith.constant 0 : i32
    %c0_i32_1 = arith.constant 0 : i32
    return %c0_i32, %c0_i32_0 : i32, i32
  }
  func.func @transform_9(%arg0: i32) -> (i32, i32, i32) {
    %c0_i32 = arith.constant 0 : i32
    %c0_i32_0 = arith.constant 0 : i32
    %c0_i32_1 = arith.constant 0 : i32
    return %arg0, %c0_i32, %c0_i32_0 : i32, i32, i32
  }
}

</mosaic_0001>

<bundles_post_ra>
// kernel: tpu_custom_call.1
= control target key start
LH: loop header
LB: loop body
LE: loop exit
PB: predicated region body
PF: predicated region fallthrough
CT: control target
= control target key end

     0   :  { %14 = vsyncpa [#allocation6], 0  ;;  %s2664_s0 = inlined_call_operand.vmem [shape: f32[128,16], index: 0, kind: input, shape index: {}]   ;;  %s2665_s1 = inlined_call_operand.vmem [shape: f32[48,32], index: 1, kind: input, shape index: {}]   ;;  %s2666_s2 = inlined_call_operand.vmem [shape: f32[1,32], index: 2, kind: input, shape index: {}]   ;;  %s2667_s3 = inlined_call_operand.vmem [shape: f32[160,32], index: 3, kind: input, shape index: {}]   ;;  %s2668_s4 = inlined_call_operand.vmem [shape: f32[1,32], index: 4, kind: input, shape index: {}]   ;;  %s2669_s5 = inlined_call_operand.vmem [shape: f32[224,32], index: 5, kind: input, shape index: {}]   ;;  %s2670_s6 = inlined_call_operand.vmem [shape: f32[1,32], index: 6, kind: input, shape index: {}]   ;;  %s2671_s7 = inlined_call_operand.vmem [shape: f32[32,32], index: 7, kind: input, shape index: {}]   ;;  %s2672_s8 = inlined_call_operand.vmem [shape: f32[1,32], index: 8, kind: input, shape index: {}]   ;;  %s2673_s9 = inlined_call_operand.hbm [shape: f32[2,4,32], index: 9, kind: output, shape index: {}]  }
   0x1   :  { %16 = vsyncpa [#allocation6 + $0x1], 0  ;;  %s2039_s30 = smov 0   ;;  %s2041_s10 = smov 0  }
   0x2   :  { %s2043_s11 = smov 0   ;;  %s2045_s12 = smov 0  }
   0x3 LB: > { %s2060_s13 = sadd.s32 4294967295, %s1980_s12   ;;  %s1766_s14 = sadd.s32 4294967294, %s1980_s12   ;;  %s1980_s12 = sphi %s2045_s12, %s2689_s12   ;;  %s1976_s11 = sphi %s2043_s11, %s2688_s11   ;;  %s1972_s10 = sphi %s2041_s10, %s2687_s10   ;;  %s1968_s30 = sphi %s2039_s30, %s2686_s30  }
   0x4   : > { %s2064_s15 = sadd.s32 1, %s1980_s12   ;;  %s223_s16 = sadd.s32 1, %s1976_s11 }
   0x5   : > { %s220_s17 = ssub.s32 %s1980_s12, %s2064_s15  ;;  %p233_p0 = scmp.ne.s32.totalorder %s1976_s11, %s1972_s10 }
   0x6   : > { %p221_p1 = scmp.eq.s32.totalorder %s220_s17, 0  ;;  %p234_p2 = scmp.eq.s32.totalorder %s2060_s13, 1 }
   0x7   : > { %p239_p3 = scmp.ne.s32.totalorder %s1972_s10, %s1968_s30  ;;  %p240_p4 = scmp.eq.s32.totalorder %s1766_s14, 1 }
   0x8   : > { %s2075_s18 = scalar_select %p221_p1, %s1976_s11, %s223_s16  }
   0x9   : > { %p2077_p5 = por %p234_p2, %p233_p0  ;;  %p2081_p6 = por %p240_p4, %p239_p3 }
   0xa   : > { %p1769_p7 = scmp.ge.s32.totalorder %s1980_s12, 1  ;;  %p291_p8 = scmp.lt.s32.totalorder %s1980_s12, 3 }
   0xc   : > { %p292_p9 = pnand %p1769_p7, %p291_p8 }
   0xd   : > { %s1771_s21 = sshll.u32 (!%p292_p9), %s2060_s13, 3  ;;  %s1983_s27 = smov (!%p292_p9), 32  }
   0xe   : > { %295 = sbr.rel (%p292_p9) target bundleno = 1265 (0x4f1), region = 56  ;;  %p328_p10 = scmp.lt.s32.totalorder (!%p292_p9), %s1771_s21, 15 }
   0xf   : > { %s1985_s25 = smov (!%p292_p9), 64   ;;  %s1986_s26 = smov (!%p292_p9), 96  }
  0x13   : > { %v341_v0 = vlaneseq  ;;  %v695_v1 = vld [vmem:[%s2665_s1 + $0x28] sm:$0xff]  ;;  %v694_v2 = vld [vmem:[%s2665_s1 + $0x20] sm:$0xff]  ;;  %v693_v4 = vld [vmem:[%s2665_s1 + $0x18] sm:$0xff]  ;;  %s2691_s21 = smov (!%p328_p10, %s1771_s21), 15  ;;  %vm535_vm0 = vcmask 1046528   ;;  %vm454_vm3 = vcmask 1040384  }
  0x14   : > { %1815 = vmatprep.subr.mxu1 %v695_v1  ;;  %v692_v7 = vld [vmem:[%s2665_s1 + $0x10] sm:$0xff]  ;;  %s1772_s14 = sshll.u32 %s2691_s21, 3  ;;  %v691_v10 = vld [vmem:[%s2665_s1 + $0x8] sm:$0xff]  ;;  %s1982_s21 = smov 16   ;;  %v690_v24 = vld [vmem:[%s2665_s1] sm:$0xff]  ;;  %vm672_vm7 = vcmask 130048  }
  0x15   : > { %v2094_v3 = vshrl.u32 %v341_v0, 7  ;;  %1816 = vmatpush3.msra.mxu1 %v695_v1  ;;  %s2111_s22 = scalar_lea.vmem %s2664_s0, %s1772_s14  ;;  %vm681_vm8 = vcmask 261120   ;;  %vm703_vm9 = vcmask 392192   ;;  %vm920_vm13 = vcmask 1041408   ;;  %s324_s14 = sand.u32 1, %s1972_s10  }
  0x16   : > { %1817 = vmatprep.subr.mxu1 %v694_v2  ;;  %v336_v11 = vld [vmem:[%s2111_s22 + $0x18] sm:$0xff]  ;;  %v2120_v12 = vld [vmem:[%s2111_s22] sm:$0xff]  ;;  %v334_v13 = vld [vmem:[%s2111_s22 + $0x8] sm:$0xff]  ;;  %vm1041_vm15 = vcmask 1045504   ;;  %s1770_s16 = sshll.u32 %s324_s14, 2  ;;  %s1694_s28 = scalar_lea.sflag [#allocation6], %s324_s14 }
  0x17   : > { %v2100_v5 = vadd.s32 8, %v2094_v3  ;;  %v2103_v6 = vadd.s32 24, %v2094_v3  ;;  %1818 = vmatpush3.msra.mxu1 %v694_v2  ;;  %622 = vrot.lane.b32.xlu1 %v336_v11, %s1982_s21  ;;  %v536_v14 = vrot.slane %v2120_v12, 1  ;;  %v335_v15 = vld [vmem:[%s2111_s22 + $0x10] sm:$0xff]  ;;  %v337_v16 = vld [vmem:[%s2111_s22 + $0x20] sm:$0xff]  ;;  %v537_v17 = vrot.slane %v334_v13, 1 }
  0x18   : > { %1819 = vmatprep.subr.mxu1 %v693_v4  ;;  %616 = vrot.lane.b32.xlu0 %v2120_v12, %s1982_s21  ;;  %v539_v18 = vrot.slane %v335_v15, 1  ;;  %v347_v19 = vadd.s32 40, %v2094_v3  ;;  %v541_v20 = vrot.slane %v336_v11, 1  ;;  %v543_v22 = vrot.slane %v337_v16, 1  ;;  %v338_v32 = vld [vmem:[%s2111_s22 + $0x28] sm:$0xff]  ;;  %v339_v35 = vld [vmem:[%s2111_s22 + $0x30] sm:$0xff] }
  0x19   : > { %v361_v8 = vand.u32 15, %v2100_v5  ;;  %v375_v9 = vand.u32 15, %v2103_v6  ;;  %1820 = vmatpush3.msra.mxu1 %v693_v4  ;;  %v460_v25 = vrot.slane %v336_v11, 7  ;;  %v538_v26 = vsel %vm535_vm0, %v536_v14, %v537_v17  ;;  %v340_v42 = vld [vmem:[%s2111_s22 + $0x38] sm:$0xff]  ;;  %s326_s17 = scalar_lea.vmem [#allocation5], %s1770_s16 }
  0x1a   : > { %1821 = vmatprep.subr.mxu1 %v692_v7  ;;  %v458_v27 = vrot.slane %v335_v15, 7  ;;  %v540_v28 = vsel %vm535_vm0, %v537_v17, %v539_v18  ;;  %v456_v29 = vrot.slane %v334_v13, 7  ;;  %v544_v31 = vsel %vm535_vm0, %v541_v20, %v543_v22  ;;  %s1707_s22 = sshll.u32 %s326_s17, 4  ;;  %s1708_s22 = int_to_ptr.vmem [resolvable:$true] %s1707_s22 }
  0x1b   : > { %1822 = vmatpush3.msra.mxu1 %v692_v7  ;;  %v561_v21 = vadd.s32 1, %v361_v8  ;;  %v563_v23 = vadd.s32 1, %v375_v9  ;;  %648 = vrot.lane.b32.xlu1 %v538_v26, %s1983_s27  ;;  %v389_v33 = vand.u32 15, %v347_v19  ;;  %v455_v34 = vrot.slane %v2120_v12, 7  ;;  %s1920_s29 = scalar_lea.vmem %s1708_s22, 64 }
  0x1c   : > { %1823 = vmatprep.subr.mxu1 %v691_v10  ;;  %618 = vrot.lane.b32.xlu0 %v334_v13, %s1982_s21  ;;  %v2142_v36 = vsel %vm454_vm3, %v458_v27, %v460_v25  ;;  %v464_v37 = vrot.slane %v338_v32, 7  ;;  %v349_v38 = vadd.s32 56, %v2094_v3  ;;  %v542_v39 = vsel %vm535_vm0, %v539_v18, %v541_v20  ;;  %p1921_p11 = scmp.ne.s32.totalorder %s1708_s22, %s1920_s29 }
  0x1d   : > { %1824 = vmatpush3.msra.mxu1 %v691_v10  ;;  %vm577_vm1 = vcmp.lt.s32.totalorder %v561_v21, 16  ;;  %vm579_vm2 = vcmp.lt.s32.totalorder %v563_v23, 16  ;;  %v545_v41 = vrot.slane %v338_v32, 1  ;;  %v457_v43 = vsel %vm454_vm3, %v455_v34, %v456_v29 }
  0x1e   : > { %v609_v30 = vsel %vm577_vm1, %v540_v28, 0.0  ;;  %1825 = vmatprep.subr.mxu1 %v690_v24  ;;  %v611_v40 = vsel %vm579_vm2, %v544_v31, 0.0  ;;  %v547_v44 = vrot.slane %v339_v35, 1  ;;  %v565_v45 = vadd.s32 1, %v389_v33  ;;  %p1922_p12 = pnand %p1921_p11, %p2077_p5 }
  0x1f   : > { %1826 = vmatpush3.msra.mxu1 %v690_v24  ;;  %650 = vrot.lane.b32.xlu1 %v609_v30, %s1983_s27  ;;  %v468_v46 = vrot.slane %v340_v42, 7  ;;  %v459_v47 = vsel %vm454_vm3, %v456_v29, %v458_v27  ;;  %v462_v48 = vrot.slane %v337_v16, 7  ;;  %v466_v49 = vrot.slane %v339_v35, 7 }
  0x20   : > { %620 = vrot.lane.b32.xlu0 %v335_v15, %s1982_s21  ;;  %v403_v50 = vand.u32 15, %v349_v38  ;;  %v548_v53 = vsel %vm535_vm0, %v545_v41, %v547_v44  ;;  %vm581_vm4 = vcmp.lt.s32.totalorder %v565_v45, 16  ;;  %v546_v56 = vsel %vm535_vm0, %v543_v22, %v545_v41  ;;  %p1923_p13 = pneg %p1922_p12 }
  0x21   : > { %v2154_v51 = vsel %vm454_vm3, %v460_v25, %v462_v48  ;;  %v2157_v52 = vsel %vm454_vm3, %v462_v48, %v464_v37  ;;  %v2161_v54 = vsel %vm454_vm3, %v464_v37, %v466_v49  ;;  %v2164_v55 = vsel %vm454_vm3, %v466_v49, %v468_v46 }
  0x22   : > { %v613_v57 = vsel %vm581_vm4, %v548_v53, 0.0  ;;  %v549_v58 = vrot.slane %v340_v42, 1  ;;  %v567_v59 = vadd.s32 1, %v403_v50  ;;  %v354_v63 = vand.u32 15, %v2094_v3  ;;  %v1155_v50 = vld [vmem:[%s2667_s3 + $0x78] sm:$0xff]  ;;  %v1153_v53 = vld [vmem:[%s2667_s3 + $0x68] sm:$0xff] }
  0x23   : > { %654 = vrot.lane.b32.xlu1 %v611_v40, %s1983_s27  ;;  %v2179_v1 = vadd.s32 16, %v2094_v3  ;;  %v478_v2 = vsel %vm454_vm3, 0.0, %v455_v34  ;;  %v346_v11 = vadd.s32 32, %v2094_v3  ;;  %v348_v20 = vadd.s32 48, %v2094_v3 }
  0x24   : > { %652 = vrot.lane.b32.xlu0 %v542_v39, %s1983_s27  ;;  %v559_v60 = vsel %vm535_vm0, %v549_v58, 0.0  ;;  %vm583_vm5 = vcmp.lt.s32.totalorder %v567_v59, 16  ;;  %v550_v61 = vsel %vm535_vm0, %v547_v44, %v549_v58  ;;  %v479_v0 = vadd.s32 4294967295, %v354_v63  ;;  %v1148_v58 = vld [vmem:[%s2667_s3 + $0x40] sm:$0xff]  ;;  %v1147_v59 = vld [vmem:[%s2667_s3 + $0x38] sm:$0xff] }
  0x25   : > { %v615_v62 = vsel %vm583_vm5, %v559_v60, 0.0  ;;  %v368_v4 = vand.u32 15, %v2179_v1  ;;  %v396_v28 = vand.u32 15, %v348_v20  ;;  %v1146_v60 = vld [vmem:[%s2667_s3 + $0x30] sm:$0xff]  ;;  %v2267_v63 = vld [vmem:[%s2666_s2] ss:$0 sm:$0xff] }
  0x26   : > { %vm487_vm6 = vcmp.ge.s32.totalorder %v479_v0, 0 }
  0x27   : > { %626 = vrot.lane.b32.xlu1 %v338_v32, %s1982_s21  ;;  %v527_v9 = vsel %vm487_vm6, %v478_v2, 0.0  ;;  %v481_v10 = vadd.s32 4294967295, %v368_v4  ;;  %v485_v33 = vadd.s32 4294967295, %v396_v28 }
  0x28   : > { %624 = vrot.lane.b32.xlu0 %v337_v16, %s1982_s21  ;;  %v382_v16 = vand.u32 15, %v346_v11 }
  0x29   : > { %vm489_vm10 = vcmp.ge.s32.totalorder %v481_v10, 0  ;;  %vm493_vm12 = vcmp.ge.s32.totalorder %v485_v33, 0 }
  0x2a   : > { %v529_v21 = vsel %vm489_vm10, %v459_v47, 0.0  ;;  %v483_v23 = vadd.s32 4294967295, %v382_v16  ;;  %v533_v41 = vsel %vm493_vm12, %v2161_v54, 0.0  ;;  %v1152_v54 = vld [vmem:[%s2667_s3 + $0x60] sm:$0xff] }
  0x2b   : > { %658 = vrot.lane.b32.xlu1 %v613_v57, %s1983_s27  ;;  %v1149_v57 = vld [vmem:[%s2667_s3 + $0x48] sm:$0xff] }
  0x2c   : > { %656 = vrot.lane.b32.xlu0 %v546_v56, %s1983_s27  ;;  %vm491_vm11 = vcmp.ge.s32.totalorder %v483_v23, 0  ;;  %v1150_v56 = vld [vmem:[%s2667_s3 + $0x50] sm:$0xff] }
  0x2d   : > { %v531_v34 = vsel %vm491_vm11, %v2154_v51, 0.0  ;;  %v1984_v51 = vmov 0.0  }
  0x2e   : > { %1179 = vmatprep.subr.mxu1 %v1984_v51  ;;  %1518 = vmatprep.subr.mxu0 %v1984_v51 }
  0x2f   : > { %630 = vrot.lane.b32.xlu1 %v340_v42, %s1982_s21 }
  0x30   : > { %628 = vrot.lane.b32.xlu0 %v339_v35, %s1982_s21 }
  0x33   : > { %662 = vrot.lane.b32.xlu1 %v615_v62, %s1983_s27  ;;  %v1144_v62 = vld [vmem:[%s2667_s3 + $0x20] sm:$0xff] }
  0x34   : > { %660 = vrot.lane.b32.xlu0 %v550_v61, %s1983_s27  ;;  %v1145_v61 = vld [vmem:[%s2667_s3 + $0x28] sm:$0xff] }
  0x89   : > { %v623_v7 = vpop.permute.xlu1 %622 }
  0x8a   : > { %v617_v8 = vpop.permute.xlu0 %616  ;;  %v676_v24 = vsel %vm672_vm7, %v2142_v36, %v623_v7 }
  0x8b   : > { %v673_v12 = vsel %vm672_vm7, %v527_v9, %v617_v8 }
  0x8d   : > { %v649_v14 = vpop.permute.xlu1 %648 }
  0x8e   : > { %v619_v13 = vpop.permute.xlu0 %618  ;;  %v682_v15 = vsel %vm681_vm8, %v673_v12, %v649_v14 }
  0x8f   : > { %1827 = vmatprep.mubr.msk.f32.mxu1 %vm703_vm9, %v682_v15  ;;  %v674_v17 = vsel %vm672_vm7, %v457_v43, %v619_v13  ;;  %v872_v15 = vand.u32 7, %v2094_v3 }
  0x91   : > { %v651_v19 = vpop.permute.xlu1 %650 }
  0x92   : > { %v621_v18 = vpop.permute.xlu0 %620  ;;  %v683_v22 = vsel %vm681_vm8, %v674_v17, %v651_v19  ;;  %v1143_v17 = vld [vmem:[%s2667_s3 + $0x18] sm:$0xff]  ;;  %v2284_v19 = vand.u32 7, %v2100_v5 }
  0x93   : > { %1828 = vmatmul.mubr.msk.f32.vlgmr.msra.gmra.mxu1 %vm703_vm9, %v683_v22  ;;  %v675_v25 = vsel %vm672_vm7, %v529_v21, %v621_v18  ;;  %v1142_v18 = vld [vmem:[%s2667_s3 + $0x10] sm:$0xff]  ;;  %v933_v21 = vadd.s32 4294967294, %v872_v15 }
  0x94   : > { %1180 = vmatpush1.msra.mxu1 %v1155_v50  ;;  %v974_v33 = vadd.s32 4294967295, %v2284_v19 }
  0x95   : > { %v655_v27 = vpop.permute.xlu1 %654  ;;  %1181 = vmatprep.subr.mxu1 %v1984_v51  ;;  %vm937_vm14 = vcmp.ge.s32.totalorder %v933_v21, 0 }
  0x96   : > { %v653_v26 = vpop.permute.xlu0 %652  ;;  %v685_v30 = vsel %vm681_vm8, %v676_v24, %v655_v27  ;;  %vm978_vm4 = vcmp.ge.s32.totalorder %v974_v33, 0 }
  0x97   : > { %v684_v29 = vsel %vm681_vm8, %v675_v25, %v653_v26  ;;  %v2289_v25 = vadd.s32 4294967295, %v872_v15  ;;  %v2292_v26 = vand.u32 7, %v2179_v1 }
  0x98   : > { %1830 = vmatprep.mubr.msk.f32.mxu1 %vm703_vm9, %v684_v29  ;;  %v1141_v29 = vld [vmem:[%s2667_s3 + $0x8] sm:$0xff] }
  0x99   : > { %1831 = vmatmul.mubr.msk.f32.gmra.mxu1 %vm703_vm9, %v685_v30  ;;  %v627_v32 = vpop.permute.xlu1 %626  ;;  %vm977_vm1 = vcmp.ge.s32.totalorder %v2289_v25, 0 }
  0x9a   : > { %v625_v31 = vpop.permute.xlu0 %624  ;;  %v678_v36 = vsel %vm672_vm7, %v2157_v52, %v627_v32  ;;  %v1154_v52 = vld [vmem:[%s2667_s3 + $0x70] sm:$0xff]  ;;  %v1054_v32 = vadd.s32 2, %v872_v15 }
  0x9b   : > { %v677_v35 = vsel %vm672_vm7, %v531_v34, %v625_v31  ;;  %1182 = vmatpush1.msra.mxu1 %v1154_v52 }
  0x9c   : > { %1183 = vmatprep.subr.mxu1 %v1984_v51  ;;  %vm1062_vm2 = vcmp.lt.s32.totalorder %v1054_v32, 8 }
  0x9d   : > { %v659_v38 = vpop.permute.xlu1 %658  ;;  %1184 = vmatpush1.msra.mxu1 %v1153_v53 }
  0x9e   : > { %v657_v37 = vpop.permute.xlu0 %656  ;;  %v687_v40 = vsel %vm681_vm8, %v678_v36, %v659_v38  ;;  %1185 = vmatprep.subr.mxu1 %v1984_v51  ;;  %v1159_v36 = vld [vmem:[%s2667_s3 + $0x98] sm:$0xff] }
  0x9f   : > { %v686_v39 = vsel %vm681_vm8, %v677_v35, %v657_v37  ;;  %1186 = vmatpush1.msra.mxu1 %v1152_v54  ;;  %v1140_v35 = vld [vmem:[%s2667_s3] sm:$0xff]  ;;  %v934_v37 = vadd.s32 4294967294, %v2284_v19 }
  0xa0   : > { %1833 = vmatprep.mubr.msk.f32.mxu1 %vm703_vm9, %v686_v39  ;;  %1187 = vmatprep.subr.mxu1 %v1984_v51 }
  0xa1   : > { %1834 = vmatmul.mubr.msk.f32.gmra.mxu1 %vm703_vm9, %v687_v40  ;;  %v631_v43 = vpop.permute.xlu1 %630  ;;  %vm938_vm5 = vcmp.ge.s32.totalorder %v934_v37, 0 }
  0xa2   : > { %v629_v42 = vpop.permute.xlu0 %628  ;;  %v680_v45 = vsel %vm672_vm7, %v2164_v55, %v631_v43  ;;  %v1151_v55 = vld [vmem:[%s2667_s3 + $0x58] sm:$0xff] }
  0xa3   : > { %v679_v44 = vsel %vm672_vm7, %v533_v41, %v629_v42  ;;  %1188 = vmatpush1.msra.mxu1 %v1151_v55  ;;  %v2314_v41 = vadd.s32 1, %v872_v15 }
  0xa4   : > { %1189 = vmatprep.subr.mxu1 %v1984_v51 }
  0xa5   : > { %v663_v47 = vpop.permute.xlu1 %662  ;;  %1190 = vmatpush1.msra.mxu1 %v1150_v56  ;;  %vm1021_vm6 = vcmp.lt.s32.totalorder %v2314_v41, 8 }
  0xa6   : > { %v661_v46 = vpop.permute.xlu0 %660  ;;  %v689_v49 = vsel %vm681_vm8, %v680_v45, %v663_v47  ;;  %1191 = vmatprep.subr.mxu1 %v1984_v51 }
  0xa7   : > { %v688_v48 = vsel %vm681_vm8, %v679_v44, %v661_v46  ;;  %1192 = vmatpush1.msra.mxu1 %v1149_v57  ;;  %v1014_v57 = vadd.s32 1, %v2284_v19 }
  0xa8   : > { %1836 = vmatprep.mubr.msk.f32.mxu1 %vm703_vm9, %v688_v48  ;;  %1193 = vmatprep.subr.mxu1 %v1984_v51  ;;  %v975_v48 = vadd.s32 4294967295, %v2292_v26 }
  0xa9   : > { %1837 = vmatmul.mubr.msk.f32.gmra.mxu1 %vm703_vm9, %v689_v49  ;;  %v1158_v49 = vld [vmem:[%s2667_s3 + $0x90] sm:$0xff]  ;;  %vm1022_vm9 = vcmp.lt.s32.totalorder %v1014_v57, 8 }
  0xaa   : > { %1194 = vmatpush1.msra.mxu1 %v1148_v58  ;;  %vm979_vm7 = vcmp.ge.s32.totalorder %v975_v48, 0 }
  0xab   : > { %1195 = vmatprep.subr.mxu1 %v1984_v51 }
  0xac   : > { %1196 = vmatpush1.msra.mxu1 %v1147_v59  ;;  %v935_v59 = vadd.s32 4294967294, %v2292_v26 }
  0xad   : > { %1197 = vmatprep.subr.mxu1 %v1984_v51 }
  0xae   : > { %1198 = vmatpush1.msra.mxu1 %v1146_v60  ;;  %v1157_v60 = vld [vmem:[%s2667_s3 + $0x88] sm:$0xff]  ;;  %vm939_vm10 = vcmp.ge.s32.totalorder %v935_v59, 0 }
  0xaf   : > { %1199 = vmatprep.subr.mxu1 %v1984_v51 }
  0xb0   : > { %1200 = vmatpush1.msra.mxu1 %v1145_v61  ;;  %v1156_v61 = vld [vmem:[%s2667_s3 + $0x80] sm:$0xff] }
  0xb1   : > { %1201 = vmatprep.subr.mxu1 %v1984_v51 }
  0xb2   : > { %1202 = vmatpush1.msra.mxu1 %v1144_v62 }
  0xb3   : > { %1203 = vmatprep.subr.mxu1 %v1984_v51 }
  0xb4   : > { %1204 = vmatpush1.msra.mxu1 %v1143_v17 }
  0xb5   : > { %1205 = vmatprep.subr.mxu1 %v1984_v51 }
  0xb6   : > { %1206 = vmatpush1.msra.mxu1 %v1142_v18 }
  0xb7   : > { %1207 = vmatprep.subr.mxu1 %v1984_v51 }
  0xb8   : > { %1208 = vmatpush1.msra.mxu1 %v1141_v29 }
  0xb9   : > { %1209 = vmatprep.subr.mxu1 %v1984_v51 }
  0xba   : > { %1210 = vmatpush1.msra.mxu1 %v1140_v35 }
  0xbb   : > { %1235 = vmatprep.subr.mxu1 %v1984_v51 }
  0xbc   : > { %1236 = vmatpush2.msra.mxu1 %v1159_v36 }
  0xbd   : > { %1237 = vmatprep.subr.mxu1 %v1984_v51 }
  0xbe   : > { %1238 = vmatpush2.msra.mxu1 %v1158_v49 }
  0xbf   : > { %1239 = vmatprep.subr.mxu1 %v1984_v51 }
  0xc0   : > { %1240 = vmatpush2.msra.mxu1 %v1157_v60 }
  0xc1   : > { %1241 = vmatprep.subr.mxu1 %v1984_v51 }
  0xc2   : > { %1242 = vmatpush2.msra.mxu1 %v1156_v61 }
 0x153   : > { %v1829_v0 = vpop.f32.mrf.mxu1 }
 0x154   : > { %v800_v2 = vadd.f32 %v1829_v0, %v2267_v63 }
 0x155   : > { %v794_v4 = vpop.f32.mrf.mxu1 }
 0x156   : > { %v834_v7 = vmax.f32 %v800_v2, 0.0  ;;  %v795_v8 = vadd.f32 %v2267_v63, %v794_v4 }
 0x158   : > { %842 = vst.msk [vmem:[#allocation2 + $0x8] sm:$0xff] %vm681_vm8, %v834_v7  ;;  %v833_v9 = vmax.f32 %v795_v8, 0.0 }
 0x159   : > { %v1832_v10 = vpop.f32.mrf.mxu1 }
 0x15a   : > { %v810_v11 = vadd.f32 %v1832_v10, %v2267_v63  ;;  %841 = vst.msk [vmem:[#allocation2] sm:$0xff] %vm681_vm8, %v833_v9  ;;  %v1055_v10 = vadd.s32 2, %v2284_v19 }
 0x15b   : > { %v804_v12 = vpop.f32.mrf.mxu1 }
 0x15c   : > { %v836_v13 = vmax.f32 %v810_v11, 0.0  ;;  %v805_v14 = vadd.f32 %v2267_v63, %v804_v12  ;;  %vm1063_vm11 = vcmp.lt.s32.totalorder %v1055_v10, 8 }
 0x15e   : > { %844 = vst.msk [vmem:[#allocation2 + $0x18] sm:$0xff] %vm681_vm8, %v836_v13  ;;  %v835_v16 = vmax.f32 %v805_v14, 0.0  ;;  %v893_v14 = vand.u32 7, %v2103_v6 }
 0x160   : > { %843 = vst.msk [vmem:[#allocation2 + $0x10] sm:$0xff] %vm681_vm8, %v835_v16  ;;  %v936_v25 = vadd.s32 4294967294, %v893_v14  ;;  %v976_v37 = vadd.s32 4294967295, %v893_v14 }
 0x161   : > { %v1835_v20 = vpop.f32.mrf.mxu1  ;;  %v849_v23 = vld [vmem:[#allocation2] ss:$2 sm:$0xff]  ;;  %v857_v24 = vld [vmem:[#allocation2 + $0x1] ss:$2 sm:$0xff] }
 0x162   : > { %v820_v22 = vadd.f32 %v1835_v20, %v2267_v63  ;;  %v2294_v28 = vmax.f32 %v849_v23, %v857_v24  ;;  %v1015_v24 = vadd.s32 1, %v2292_v26 }
 0x163   : > { %v814_v27 = vpop.f32.mrf.mxu1 }
 0x164   : > { %v838_v30 = vmax.f32 %v820_v22, 0.0  ;;  %v815_v31 = vadd.f32 %v2267_v63, %v814_v27  ;;  %v961_v1 = vrot.slane %v2294_v28, 7  ;;  %v921_v34 = vrot.slane %v2294_v28, 6 }
 0x165   : > { %v1042_v46 = vrot.slane %v2294_v28, 2  ;;  %v1001_v12 = vrot.slane %v2294_v28, 1  ;;  %vm1023_vm12 = vcmp.lt.s32.totalorder %v1015_v24, 8  ;;  %v1492_v24 = vld [vmem:[%s2669_s5 + $0x78] sm:$0xff] }
 0x166   : > { %846 = vst.msk [vmem:[#allocation2 + $0x28] sm:$0xff] %vm681_vm8, %v838_v30  ;;  %v837_v38 = vmax.f32 %v815_v31, 0.0  ;;  %v932_v42 = vsel %vm920_vm13, 0.0, %v921_v34  ;;  %v972_v47 = vsel %vm454_vm3, 0.0, %v961_v1  ;;  %1519 = vmatpush1.msra.mxu0 %v1492_v24  ;;  %v1494_v24 = vld [vmem:[%s2669_s5 + $0x88] sm:$0xff] }
 0x167   : > { %v851_v39 = vld [vmem:[#allocation2 + $0x10] ss:$2 sm:$0xff]  ;;  %v859_v40 = vld [vmem:[#allocation2 + $0x11] ss:$2 sm:$0xff]  ;;  %v2322_v44 = vsel %vm937_vm14, %v932_v42, 0.0  ;;  %v997_v8 = vsel %vm977_vm1, %v972_v47, 0.0  ;;  %1520 = vmatprep.subr.mxu0 %v1984_v51 }
 0x168   : > { %845 = vst.msk [vmem:[#allocation2 + $0x20] sm:$0xff] %vm681_vm8, %v837_v38  ;;  %v2319_v43 = vmax.f32 %v851_v39, %v859_v40  ;;  %v1056_v38 = vadd.s32 2, %v2292_v26  ;;  %v1057_v40 = vadd.s32 2, %v893_v14  ;;  %vm940_vm14 = vcmp.ge.s32.totalorder %v936_v25, 0  ;;  %v1491_v25 = vld [vmem:[%s2669_s5 + $0x70] sm:$0xff] }
 0x169   : > { %v1838_v45 = vpop.f32.mrf.mxu1  ;;  %vm980_vm1 = vcmp.ge.s32.totalorder %v976_v37, 0  ;;  %1521 = vmatpush1.msra.mxu0 %v1491_v25  ;;  %v1479_v37 = vld [vmem:[%s2669_s5 + $0x10] sm:$0xff] }
 0x16a   : > { %v830_v50 = vadd.f32 %v1838_v45, %v2267_v63  ;;  %v1895_v52 = vpack.i.bf16 %v2319_v43, %v2294_v28  ;;  %v1043_v53 = vrot.slane %v2319_v43, 2  ;;  %v962_v54 = vrot.slane %v2319_v43, 7  ;;  %1522 = vmatprep.subr.mxu0 %v1984_v51 }
 0x16b   : > { %v824_v55 = vpop.f32.mrf.mxu1  ;;  %v1002_v56 = vrot.slane %v2319_v43, 1  ;;  %v922_v58 = vrot.slane %v2319_v43, 6 }
 0x16c   : > { %v840_v62 = vmax.f32 %v830_v50, 0.0  ;;  %v825_v0 = vadd.f32 %v2267_v63, %v824_v55  ;;  %1896 = vrot.lane.b32.xlu1 %v1895_v52, %s1985_s25  ;;  %v1044_v2 = vsel %vm1041_vm15, %v1042_v46, %v1043_v53  ;;  %v963_v4 = vsel %vm454_vm3, %v961_v1, %v962_v54 }
 0x16d   : > { %v1078_v7 = vsel %vm1062_vm2, %v1044_v2, 0.0  ;;  %v998_v9 = vsel %vm978_vm4, %v963_v4, 0.0  ;;  %v923_v13 = vsel %vm920_vm13, %v921_v34, %v922_v58  ;;  %v1003_v19 = vsel %vm535_vm0, %v1001_v12, %v1002_v56 }
 0x16e   : > { %848 = vst.msk [vmem:[#allocation2 + $0x38] sm:$0xff] %vm681_vm8, %v840_v62  ;;  %v839_v63 = vmax.f32 %v825_v0, 0.0  ;;  %1783 = vmatprep.mubr.msk.f32.mxu1 %vm681_vm8, %v1078_v7  ;;  %v1900_v11 = vpack.i.bf16 %v998_v9, %v997_v8  ;;  %v2363_v17 = vsel %vm938_vm5, %v923_v13, 0.0  ;;  %v1037_v23 = vsel %vm1021_vm6, %v1003_v19, 0.0 }
 0x16f   : > { %v853_v15 = vld [vmem:[#allocation2 + $0x20] ss:$2 sm:$0xff]  ;;  %v861_v16 = vld [vmem:[#allocation2 + $0x21] ss:$2 sm:$0xff]  ;;  %v1016_v46 = vadd.s32 1, %v893_v14  ;;  %vm1064_vm2 = vcmp.lt.s32.totalorder %v1056_v38, 8 }
 0x170   : > { %847 = vst.msk [vmem:[#allocation2 + $0x30] sm:$0xff] %vm681_vm8, %v839_v63  ;;  %1901 = vrot.lane.b32.xlu0 %v1900_v11, %s1983_s27  ;;  %v866_v18 = vmax.f32 %v853_v15, %v861_v16  ;;  %vm1065_vm4 = vcmp.lt.s32.totalorder %v1057_v40, 8  ;;  %vm2675_vm6 = vcmask 523264   ;;  %v1478_v38 = vld [vmem:[%s2669_s5 + $0x8] sm:$0xff]  ;;  %v1504_v40 = vld [vmem:[%s2669_s5 + $0xd8] sm:$0xff] }
 0x171   : > { %vm1024_vm5 = vcmp.lt.s32.totalorder %v1016_v46, 8 }
 0x172   : > { %v964_v20 = vrot.slane %v866_v18, 7  ;;  %v1004_v6 = vrot.slane %v866_v18, 1  ;;  %v924_v21 = vrot.slane %v866_v18, 6  ;;  %v1045_v22 = vrot.slane %v866_v18, 2 }
 0x174   : > { %v965_v27 = vsel %vm454_vm3, %v962_v54, %v964_v20  ;;  %v1005_v28 = vsel %vm535_vm0, %v1002_v56, %v1004_v6  ;;  %v925_v29 = vsel %vm920_vm13, %v922_v58, %v924_v21  ;;  %v1046_v30 = vsel %vm1041_vm15, %v1043_v53, %v1045_v22 }
 0x175   : > { %v999_v31 = vsel %vm979_vm7, %v965_v27, 0.0  ;;  %v1038_v32 = vsel %vm1022_vm9, %v1005_v28, 0.0  ;;  %v959_v33 = vsel %vm939_vm10, %v925_v29, 0.0  ;;  %v1079_v1 = vsel %vm1063_vm11, %v1046_v30, 0.0  ;;  %v1490_v27 = vld [vmem:[%s2669_s5 + $0x68] sm:$0xff]  ;;  %v1489_v28 = vld [vmem:[%s2669_s5 + $0x60] sm:$0xff] }
 0x176   : > { %1090 = vrot.lane.b32.xlu1 %v999_v31, %s1983_s27  ;;  %v1905_v34 = vpack.i.bf16 %v1038_v32, %v1037_v23  ;;  %vm2674_vm7 = vcmask 785408   ;;  %1523 = vmatpush1.msra.mxu0 %v1490_v27  ;;  %v1488_v29 = vld [vmem:[%s2669_s5 + $0x58] sm:$0xff]  ;;  %v1487_v30 = vld [vmem:[%s2669_s5 + $0x50] sm:$0xff]  ;;  %v1486_v31 = vld [vmem:[%s2669_s5 + $0x48] sm:$0xff]  ;;  %vm1307_vm9 = vcmask 1042432  }
 0x177   : > { %v855_v35 = vld [vmem:[#allocation2 + $0x30] ss:$2 sm:$0xff]  ;;  %v863_v36 = vld [vmem:[#allocation2 + $0x31] ss:$2 sm:$0xff]  ;;  %1524 = vmatprep.subr.mxu0 %v1984_v51  ;;  %v1485_v32 = vld [vmem:[%s2669_s5 + $0x40] sm:$0xff] }
 0x178   : > { %1906 = vrot.lane.b32.xlu0 %v1905_v34, %s1986_s26  ;;  %v867_v39 = vmax.f32 %v855_v35, %v863_v36  ;;  %1525 = vmatpush1.msra.mxu0 %v1489_v28  ;;  %v1482_v34 = vld [vmem:[%s2669_s5 + $0x28] sm:$0xff]  ;;  %v1481_v35 = vld [vmem:[%s2669_s5 + $0x20] sm:$0xff]  ;;  %v1480_v36 = vld [vmem:[%s2669_s5 + $0x18] sm:$0xff] }
 0x179   : > { %1526 = vmatprep.subr.mxu0 %v1984_v51 }
 0x17a   : > { %v1006_v41 = vrot.slane %v867_v39, 1  ;;  %v966_v42 = vrot.slane %v867_v39, 7  ;;  %v926_v43 = vrot.slane %v867_v39, 6  ;;  %v1047_v45 = vrot.slane %v867_v39, 2  ;;  %1527 = vmatpush1.msra.mxu0 %v1488_v29 }
 0x17b   : > { %1528 = vmatprep.subr.mxu0 %v1984_v51 }
 0x17c   : > { %1102 = vrot.lane.b32.xlu0 %v866_v18, %s1985_s25  ;;  %v1007_v47 = vsel %vm535_vm0, %v1004_v6, %v1006_v41  ;;  %v967_v26 = vsel %vm454_vm3, %v964_v20, %v966_v42  ;;  %v927_v48 = vsel %vm920_vm13, %v924_v21, %v926_v43  ;;  %v1048_v52 = vsel %vm1041_vm15, %v1045_v22, %v1047_v45 }
 0x17d   : > { %v1039_v49 = vsel %vm1023_vm12, %v1007_v47, 0.0  ;;  %v960_v50 = vsel %vm940_vm14, %v927_v48, 0.0  ;;  %v1053_v53 = vsel %vm1041_vm15, %v1047_v45, 0.0  ;;  %v1000_v54 = vsel %vm980_vm1, %v967_v26, 0.0  ;;  %1529 = vmatpush1.msra.mxu0 %v1487_v30  ;;  %v1503_v48 = vld [vmem:[%s2669_s5 + $0xd0] sm:$0xff] }
 0x17e   : > { %1118 = vrot.lane.b32.xlu1 %v1039_v49, %s1986_s26  ;;  %v1080_v55 = vsel %vm1064_vm2, %v1048_v52, 0.0  ;;  %v1081_v56 = vsel %vm1065_vm4, %v1053_v53, 0.0  ;;  %v1012_v57 = vsel %vm535_vm0, %v1006_v41, 0.0  ;;  %1530 = vmatprep.subr.mxu0 %v1984_v51  ;;  %v1782_v41 = vld [vmem:[%s2668_s4] ss:$0 sm:$0xff]  ;;  %v1502_v49 = vld [vmem:[%s2669_s5 + $0xc8] sm:$0xff] }
 0x17f   : > { %v1040_v58 = vsel %vm1024_vm5, %v1012_v57, 0.0  ;;  %1531 = vmatpush1.msra.mxu0 %v1486_v31  ;;  %v1501_v53 = vld [vmem:[%s2669_s5 + $0xc0] sm:$0xff]  ;;  %vm1408_vm12 = vcmask 1044480  }
 0x180   : > { %1092 = vrot.lane.b32.xlu0 %v1000_v54, %s1983_s27  ;;  %1532 = vmatprep.subr.mxu0 %v1984_v51  ;;  %v1493_v31 = vld [vmem:[%s2669_s5 + $0x80] sm:$0xff] }
 0x181   : > { %1533 = vmatpush1.msra.mxu0 %v1485_v32 }
 0x182   : > { %1104 = vrot.lane.b32.xlu1 %v867_v39, %s1985_s25  ;;  %1534 = vmatprep.subr.mxu0 %v1984_v51  ;;  %v1477_v39 = vld [vmem:[%s2669_s5] sm:$0xff] }
 0x184   : > { %1120 = vrot.lane.b32.xlu0 %v1040_v58, %s1986_s26 }
 0x1de   : > { %v1897_v61 = vpop.permute.xlu1 %1896 }
 0x1df   : > { %v1898_v2 = vunpack.i.l.bf16 %v1897_v61  ;;  %v1899_v12 = vunpack.i.h.bf16 %v1897_v61  ;;  %v1285_v61 = vand.u32 3, %v2094_v3  ;;  %v2504_v3 = vand.u32 3, %v2100_v5  ;;  %v1496_v5 = vld [vmem:[%s2669_s5 + $0x98] sm:$0xff] }
 0x1e1   : > { %v1375_v25 = vadd.s32 1, %v2504_v3  ;;  %v1315_v32 = vadd.s32 4294967293, %v2504_v3 }
 0x1e2   : > { %v1902_v59 = vpop.permute.xlu0 %1901 }
 0x1e3   : > { %v1903_v60 = vunpack.i.l.bf16 %v1902_v59  ;;  %v1904_v62 = vunpack.i.h.bf16 %v1902_v59  ;;  %v1499_v59 = vld [vmem:[%s2669_s5 + $0xb0] sm:$0xff] }
 0x1e5   : > { %v1126_v0 = vsel %vm681_vm8, %v2322_v44, %v1903_v60  ;;  %v1127_v11 = vsel %vm681_vm8, %v2363_v17, %v1904_v62 }
 0x1e6   : > { %v1131_v9 = vsel %vm2675_vm6, %v1126_v0, %v1898_v2  ;;  %v1132_v14 = vsel %vm2675_vm6, %v1127_v11, %v1899_v12  ;;  %v1498_v0 = vld [vmem:[%s2669_s5 + $0xa8] sm:$0xff]  ;;  %v1497_v11 = vld [vmem:[%s2669_s5 + $0xa0] sm:$0xff]  ;;  %v1394_v12 = vadd.s32 2, %v1285_v61 }
 0x1e8   : > { %v1091_v8 = vpop.permute.xlu1 %1090  ;;  %vm1398_vm14 = vcmp.lt.s32.totalorder %v1394_v12, 4 }
 0x1e9   : > { %v1128_v15 = vsel %vm681_vm8, %v959_v33, %v1091_v8  ;;  %v1484_v33 = vld [vmem:[%s2669_s5 + $0x38] sm:$0xff] }
 0x1ea   : > { %v1907_v4 = vpop.permute.xlu0 %1906  ;;  %1535 = vmatpush1.msra.mxu0 %v1484_v33 }
 0x1eb   : > { %v1908_v7 = vunpack.i.l.bf16 %v1907_v4  ;;  %v1909_v10 = vunpack.i.h.bf16 %v1907_v4  ;;  %1536 = vmatprep.subr.mxu0 %v1984_v51 }
 0x1ed   : > { %v1136_v63 = vsel %vm2674_vm7, %v1131_v9, %v1908_v7  ;;  %v1137_v16 = vsel %vm2674_vm7, %v1132_v14, %v1909_v10  ;;  %v1314_v9 = vadd.s32 4294967293, %v1285_v61  ;;  %v1335_v14 = vadd.s32 4294967294, %v2504_v3 }
 0x1ee   : > { %v1103_v13 = vpop.permute.xlu0 %1102  ;;  %1244 = vmatmul.mubr.f32.vlgmr.msra.gmra.mxu1 %v1136_v63  ;;  %v1334_v63 = vadd.s32 4294967294, %v1285_v61 }
 0x1ef   : > { %1784 = vmatprep.mubr.msk.f32.mxu1 %vm681_vm8, %v1079_v1  ;;  %v1133_v18 = vsel %vm2675_vm6, %v1128_v15, %v1103_v13  ;;  %v1483_v1 = vld [vmem:[%s2669_s5 + $0x30] sm:$0xff]  ;;  %v2515_v13 = vadd.s32 4294967295, %v1285_v61  ;;  %vm1316_vm10 = vcmp.ge.s32.totalorder %v1314_v9, 0  ;;  %v2523_v15 = vadd.s32 3, %v1285_v61 }
 0x1f0   : > { %v1119_v44 = vpop.permute.xlu1 %1118  ;;  %1537 = vmatpush1.msra.mxu0 %v1483_v1  ;;  %vm1336_vm11 = vcmp.ge.s32.totalorder %v1334_v63, 0  ;;  %vm1337_vm2 = vcmp.ge.s32.totalorder %v1335_v14, 0 }
 0x1f1   : > { %v1138_v6 = vsel %vm2674_vm7, %v1133_v18, %v1119_v44  ;;  %1538 = vmatprep.subr.mxu0 %v1984_v51  ;;  %v1495_v18 = vld [vmem:[%s2669_s5 + $0x90] sm:$0xff]  ;;  %vm1356_vm1 = vcmp.ge.s32.totalorder %v2515_v13, 0  ;;  %vm1419_vm4 = vcmp.lt.s32.totalorder %v2523_v15, 4 }
 0x1f2   : > { %v1093_v19 = vpop.permute.xlu0 %1092  ;;  %1249 = vmatmul.mubr.f32.gmra.mxu1 %v1137_v16  ;;  %1539 = vmatpush1.msra.mxu0 %v1482_v34  ;;  %v1355_v16 = vadd.s32 4294967295, %v2504_v3 }
 0x1f3   : > { %v1129_v20 = vsel %vm681_vm8, %v960_v50, %v1093_v19  ;;  %1785 = vmatprep.mubr.msk.f32.mxu1 %vm681_vm8, %v1080_v55  ;;  %1540 = vmatprep.subr.mxu0 %v1984_v51 }
 0x1f4   : > { %v1105_v17 = vpop.permute.xlu1 %1104  ;;  %1541 = vmatpush1.msra.mxu0 %v1481_v35  ;;  %vm1357_vm5 = vcmp.ge.s32.totalorder %v1355_v16, 0 }
 0x1f5   : > { %v1134_v21 = vsel %vm2675_vm6, %v1129_v20, %v1105_v17  ;;  %1542 = vmatprep.subr.mxu0 %v1984_v51  ;;  %v1395_v17 = vadd.s32 2, %v2504_v3  ;;  %vm1317_vm6 = vcmp.ge.s32.totalorder %v1315_v32, 0 }
 0x1f6   : > { %v1121_v22 = vpop.permute.xlu0 %1120  ;;  %1254 = vmatmul.mubr.f32.gmra.mxu1 %v1138_v6  ;;  %1543 = vmatpush1.msra.mxu0 %v1480_v36  ;;  %v1374_v6 = vadd.s32 1, %v1285_v61 }
 0x1f7   : > { %1786 = vmatprep.mubr.msk.f32.mxu1 %vm681_vm8, %v1081_v56  ;;  %v1139_v23 = vsel %vm2674_vm7, %v1134_v21, %v1121_v22  ;;  %1544 = vmatprep.subr.mxu0 %v1984_v51  ;;  %v1500_v56 = vld [vmem:[%s2669_s5 + $0xb8] sm:$0xff]  ;;  %vm1379_vm7 = vcmp.lt.s32.totalorder %v1375_v25, 4  ;;  %v1608_v25 = vld [vmem:[%s2671_s7 + $0x8] sm:$0xff] }
 0x1f8   : > { %1545 = vmatpush1.msra.mxu0 %v1479_v37 }
 0x1f9   : > { %1546 = vmatprep.subr.mxu0 %v1984_v51 }
 0x1fa   : > { %1259 = vmatmul.mubr.f32.gmra.mxu1 %v1139_v23  ;;  %1547 = vmatpush1.msra.mxu0 %v1478_v38 }
 0x1fb   : > { %1548 = vmatprep.subr.mxu0 %v1984_v51 }
 0x1fc   : > { %1549 = vmatpush1.msra.mxu0 %v1477_v39 }
 0x1fd   : > { %1558 = vmatprep.subr.mxu0 %v1984_v51 }
 0x1fe   : > { %1559 = vmatpush2.msra.mxu0 %v1504_v40 }
 0x1ff   : > { %1560 = vmatprep.subr.mxu0 %v1984_v51 }
 0x200   : > { %1561 = vmatpush2.msra.mxu0 %v1503_v48 }
 0x201   : > { %1562 = vmatprep.subr.mxu0 %v1984_v51 }
 0x202   : > { %1563 = vmatpush2.msra.mxu0 %v1502_v49 }
 0x203   : > { %1564 = vmatprep.subr.mxu0 %v1984_v51 }
 0x204   : > { %1565 = vmatpush2.msra.mxu0 %v1501_v53  ;;  %v1416_v53 = vadd.s32 3, %v2504_v3 }
 0x205   : > { %1566 = vmatprep.subr.mxu0 %v1984_v51 }
 0x206   : > { %1567 = vmatpush2.msra.mxu0 %v1500_v56 }
 0x207   : > { %1568 = vmatprep.subr.mxu0 %v1984_v51 }
 0x208   : > { %1569 = vmatpush2.msra.mxu0 %v1499_v59 }
 0x209   : > { %1570 = vmatprep.subr.mxu0 %v1984_v51 }
 0x20a   : > { %1571 = vmatpush2.msra.mxu0 %v1498_v0 }
 0x20b   : > { %1572 = vmatprep.subr.mxu0 %v1984_v51 }
 0x20c   : > { %1573 = vmatpush2.msra.mxu0 %v1497_v11 }
 0x20d   : > { %1574 = vmatprep.subr.mxu0 %v1984_v51 }
 0x20e   : > { %1575 = vmatpush2.msra.mxu0 %v1496_v5 }
 0x20f   : > { %1576 = vmatprep.subr.mxu0 %v1984_v51 }
 0x210   : > { %1577 = vmatpush2.msra.mxu0 %v1495_v18 }
 0x211   : > { %1578 = vmatprep.subr.mxu0 %v1984_v51 }
 0x212   : > { %1579 = vmatpush2.msra.mxu0 %v1494_v24  ;;  %v1609_v24 = vld [vmem:[%s2671_s7 + $0x10] sm:$0xff] }
 0x213   : > { %1580 = vmatprep.subr.mxu0 %v1984_v51 }
 0x214   : > { %1581 = vmatpush2.msra.mxu0 %v1493_v31 }
 0x215   : > { %1839 = vmatprep.subr.mxu0 %v1984_v51 }
 0x2ae   : > { %v1245_v42 = vpop.f32.mrf.mxu1 }
 0x2af   : > { %v1246_v43 = vadd.f32 %v1782_v41, %v1245_v42 }
 0x2b0   : > { %v1247_v45 = vpop.f32.mrf.mxu1 }
 0x2b1   : > { %v1264_v46 = vmax.f32 %v1246_v43, 0.0 }
 0x2b2   : > { %v1250_v47 = vpop.f32.mrf.mxu1 }
 0x2b3   : > { %1268 = vst.msk [vmem:[#allocation3] sm:$0xff] %vm681_vm8, %v1264_v46  ;;  %v1251_v26 = vadd.f32 %v1782_v41, %v1250_v47 }
 0x2b4   : > { %v1252_v50 = vpop.f32.mrf.mxu1 }
 0x2b5   : > { %v1265_v52 = vmax.f32 %v1251_v26, 0.0 }
 0x2b6   : > { %v1255_v54 = vpop.f32.mrf.mxu1 }
 0x2b7   : > { %1269 = vst.msk [vmem:[#allocation3 + $0x8] sm:$0xff] %vm681_vm8, %v1265_v52  ;;  %v1256_v55 = vadd.f32 %v1782_v41, %v1255_v54 }
 0x2b8   : > { %v1257_v57 = vpop.f32.mrf.mxu1 }
 0x2b9   : > { %v1266_v58 = vmax.f32 %v1256_v55, 0.0 }
 0x2ba   : > { %v1260_v60 = vpop.f32.mrf.mxu1 }
 0x2bb   : > { %1270 = vst.msk [vmem:[#allocation3 + $0x10] sm:$0xff] %vm681_vm8, %v1266_v58  ;;  %v1261_v62 = vadd.f32 %v1782_v41, %v1260_v60 }
 0x2bc   : > { %v1262_v2 = vpop.f32.mrf.mxu1 }
 0x2bd   : > { %v1267_v4 = vmax.f32 %v1261_v62, 0.0 }
 0x2be   : > { %v1272_v7 = vld [vmem:[#allocation3] ss:$2 sm:$0xff]  ;;  %v1276_v8 = vld [vmem:[#allocation3 + $0x1] ss:$2 sm:$0xff] }
 0x2bf   : > { %1271 = vst.msk [vmem:[#allocation3 + $0x18] sm:$0xff] %vm681_vm8, %v1267_v4  ;;  %v2507_v10 = vmax.f32 %v1272_v7, %v1276_v8 }
 0x2c1   : > { %1445 = vrot.lane.b32.xlu1 %v2507_v10, %s1986_s26  ;;  %v1308_v44 = vrot.slane %v2507_v10, 5  ;;  %v1328_v19 = vrot.slane %v2507_v10, 6  ;;  %v1388_v28 = vrot.slane %v2507_v10, 2  ;;  %v1348_v30 = vrot.slane %v2507_v10, 7 }
 0x2c2   : > { %v1409_v36 = vrot.slane %v2507_v10, 3  ;;  %v1368_v46 = vrot.slane %v2507_v10, 1 }
 0x2c3   : > { %v1313_v20 = vsel %vm1307_vm9, 0.0, %v1308_v44  ;;  %v1333_v29 = vsel %vm920_vm13, 0.0, %v1328_v19  ;;  %v1353_v48 = vsel %vm454_vm3, 0.0, %v1348_v30 }
 0x2c4   : > { %v2537_v21 = vsel %vm1316_vm10, %v1313_v20, 0.0  ;;  %vm1378_vm10 = vcmp.lt.s32.totalorder %v1374_v6, 4  ;;  %v1346_v43 = vsel %vm1336_vm11, %v1333_v29, 0.0  ;;  %v1366_v58 = vsel %vm1356_vm1, %v1353_v48, 0.0 }
 0x2c5   : > { %vm1987_vm1 = vmmov 0  }
 0x2c6   : > { %v1274_v22 = vld [vmem:[#allocation3 + $0x10] ss:$2 sm:$0xff]  ;;  %v1278_v23 = vld [vmem:[#allocation3 + $0x11] ss:$2 sm:$0xff] }
 0x2c7   : > { %v1280_v27 = vmax.f32 %v1274_v22, %v1278_v23 }
 0x2c9   : > { %v1389_v33 = vrot.slane %v1280_v27, 2  ;;  %v1329_v1 = vrot.slane %v1280_v27, 6  ;;  %v1410_v34 = vrot.slane %v1280_v27, 3  ;;  %v1349_v35 = vrot.slane %v1280_v27, 7 }
 0x2ca   : > { %v1369_v37 = vrot.slane %v1280_v27, 1  ;;  %v1309_v41 = vrot.slane %v1280_v27, 5 }
 0x2cb   : > { %v1390_v38 = vsel %vm1041_vm15, %v1388_v28, %v1389_v33  ;;  %v1330_v39 = vsel %vm920_vm13, %v1328_v19, %v1329_v1  ;;  %v1350_v40 = vsel %vm454_vm3, %v1348_v30, %v1349_v35  ;;  %v1411_v26 = vsel %vm1408_vm12, %v1409_v36, %v1410_v34  ;;  %v1787_v28 = vld [vmem:[%s2670_s6] ss:$0 sm:$0xff] }
 0x2cc   : > { %v1406_v42 = vsel %vm1398_vm14, %v1390_v38, 0.0  ;;  %v1347_v45 = vsel %vm1337_vm2, %v1330_v39, 0.0  ;;  %v1367_v49 = vsel %vm1357_vm5, %v1350_v40, 0.0  ;;  %v1370_v50 = vsel %vm535_vm0, %v1368_v46, %v1369_v37 }
 0x2cd   : > { %1453 = vrot.lane.b32.xlu0 %v1406_v42, %s1983_s27  ;;  %v1910_v47 = vpack.i.bf16 %v1347_v45, %v1346_v43  ;;  %v1373_v52 = vsel %vm535_vm0, %v1369_v37, 0.0  ;;  %v1386_v54 = vsel %vm1378_vm10, %v1370_v50, 0.0  ;;  %v1310_v56 = vsel %vm1307_vm9, %v1308_v44, %v1309_v41  ;;  %v1790_v42 = vld [vmem:[%s2672_s8] ss:$0 sm:$0xff] }
 0x2ce   : > { %v1387_v55 = vsel %vm1379_vm7, %v1373_v52, 0.0  ;;  %v1427_v57 = vsel %vm1419_vm4, %v1411_v26, 0.0  ;;  %v1327_v59 = vsel %vm1317_vm6, %v1310_v56, 0.0  ;;  %v1915_v60 = vpack.i.bf16 %v1367_v49, %v1366_v58 }
 0x2cf   : > { %1911 = vrot.lane.b32.xlu1 %v1910_v47, %s1983_s27  ;;  %v1393_v61 = vsel %vm1041_vm15, %v1389_v33, 0.0  ;;  %vm1399_vm0 = vcmp.lt.s32.totalorder %v1395_v17, 4  ;;  %v1414_v62 = vsel %vm1408_vm12, %v1410_v34, 0.0  ;;  %vm1420_vm3 = vcmp.lt.s32.totalorder %v1416_v53, 4 }
 0x2d0   : > { %v1407_v0 = vsel %vm1399_vm0, %v1393_v61, 0.0  ;;  %v1428_v2 = vsel %vm1420_vm3, %v1414_v62, 0.0  ;;  %vm2678_vm13 = vcmask 523264   ;;  %vm2679_vm15 = vcmask 785408  }
 0x2d1   : > { %1461 = vrot.lane.b32.xlu0 %v1427_v57, %s1985_s25  ;;  %vm2680_vm6 = vmmov %vm2678_vm13  ;;  %vm1691_vm2 = vcmask 257024  }
 0x2d2   : > { %vm2681_vm7 = vmmov %vm2679_vm15 }
 0x2d3   : > { %1916 = vrot.lane.b32.xlu1 %v1915_v60, %s1985_s25  ;;  %vm2682_vm9 = vmmov %vm2680_vm6 }
 0x2d4   : > { %vm2683_vm11 = vmmov %vm2681_vm7 }
 0x2d5   : > { %1455 = vrot.lane.b32.xlu0 %v1407_v0, %s1983_s27  ;;  %vm2684_vm12 = vmmov %vm2680_vm6 }
 0x2d6   : > { %vm2685_vm14 = vmmov %vm2681_vm7 }
 0x2d7   : > { %1463 = vrot.lane.b32.xlu1 %v1428_v2, %s1985_s25 }
 0x2d9   : > { %1447 = vrot.lane.b32.xlu0 %v1280_v27, %s1986_s26  ;;  %v1607_v27 = vld [vmem:[%s2671_s7] sm:$0xff]  ;;  %s1793_s26 = sshll.u32 %s2060_s13, 6  ;;  %s1988_s13 = smov [#allocation5]  }
 0x2da   : > { %s2629_s21 = scalar_lea.hbm %s2673_s9, %s1793_s26  ;;  %s1924_s16 = sshll.u32 %s1988_s13, 4  ;;  %s1925_s16 = int_to_ptr.vmem [resolvable:$false] %s1924_s16 }
 0x2db   : > { %s1926_s27 = scalar_lea.vmem %s1925_s16, 128  ;;  %p1927_p0 = scmp.lt.s32.totalorder %s1708_s22, %s1925_s16 }
 0x2dc   : > { %p1928_p1 = scmp.lt.s32.totalorder %s1926_s27, %s1920_s29 }
 0x2de   : > { %p1929_p2 = por %p1928_p1, %p1927_p0 }
 0x2e0   : > { %p1930_p3 = pnand %p1929_p2, %p1923_p13 }
 0x333   : > { %v1446_v4 = vpop.permute.xlu1 %1445 }
 0x33f   : > { %v1454_v7 = vpop.permute.xlu0 %1453 }
 0x340   : > { %v1473_v9 = vsel %vm681_vm8, %v1386_v54, %v1454_v7 }
 0x341   : > { %v1912_v8 = vpop.permute.xlu1 %1911 }
 0x342   : > { %v1913_v3 = vunpack.i.l.bf16 %v1912_v8  ;;  %v1914_v12 = vunpack.i.h.bf16 %v1912_v8 }
 0x343   : > { %v1462_v10 = vpop.permute.xlu0 %1461 }
 0x344   : > { %v1475_v63 = vsel %vm2678_vm13, %v1473_v9, %v1462_v10  ;;  %v1467_v14 = vsel %vm681_vm8, %v2537_v21, %v1913_v3  ;;  %v1468_v17 = vsel %vm681_vm8, %v1327_v59, %v1914_v12  ;;  %v1610_v21 = vld [vmem:[%s2671_s7 + $0x18] sm:$0xff] }
 0x345   : > { %1788 = vmatprep.mubr.msk.f32.mxu0 %vm2679_vm15, %v1475_v63  ;;  %v1917_v11 = vpop.permute.xlu1 %1916 }
 0x346   : > { %v1918_v13 = vunpack.i.l.bf16 %v1917_v11  ;;  %v1919_v5 = vunpack.i.h.bf16 %v1917_v11 }
 0x347   : > { %v1456_v44 = vpop.permute.xlu0 %1455 }
 0x348   : > { %v1474_v15 = vsel %vm681_vm8, %v1387_v55, %v1456_v44  ;;  %v1469_v16 = vsel %vm2680_vm6, %v1467_v14, %v1918_v13  ;;  %v1470_v22 = vsel %vm2684_vm12, %v1468_v17, %v1919_v5 }
 0x349   : > { %v1464_v18 = vpop.permute.xlu1 %1463  ;;  %v1471_v19 = vsel %vm2681_vm7, %v1469_v16, %v1446_v4 }
 0x34a   : > { %v1476_v20 = vsel %vm2682_vm9, %v1474_v15, %v1464_v18  ;;  %1583 = vmatmul.mubr.f32.vlgmr.msra.gmra.mxu0 %v1471_v19 }
 0x34b   : > { %v1448_v6 = vpop.permute.xlu0 %1447  ;;  %1789 = vmatprep.mubr.msk.f32.mxu0 %vm2683_vm11, %v1476_v20  ;;  %1840 = vmatpush3.msra.mxu0 %v1610_v21 }
 0x34c   : > { %v1472_v23 = vsel %vm2685_vm14, %v1470_v22, %v1448_v6  ;;  %1841 = vmatprep.subr.mxu0 %v1984_v51 }
 0x34d   : > { %1842 = vmatpush3.msra.mxu0 %v1609_v24 }
 0x34e   : > { %1588 = vmatmul.mubr.f32.gmra.mxu0 %v1472_v23  ;;  %1843 = vmatprep.subr.mxu0 %v1984_v51 }
 0x34f   : > { %1847 = vmatprep.mubr.msk.f32.mxu0 %vm1987_vm1, %v1984_v51  ;;  %1844 = vmatpush3.msra.mxu0 %v1608_v25 }
 0x350   : > { %1845 = vmatprep.subr.mxu0 %v1984_v51 }
 0x351   : > { %1846 = vmatpush3.msra.mxu0 %v1607_v27 }
 0x40a   : > { %v1584_v29 = vpop.f32.mrf.mxu0 }
 0x40b   : > { %v1585_v30 = vadd.f32 %v1787_v28, %v1584_v29 }
 0x40c   : > { %v1586_v31 = vpop.f32.mrf.mxu0 }
 0x40d   : > { %v1593_v32 = vmax.f32 %v1585_v30, 0.0 }
 0x40e   : > { %v1589_v33 = vpop.f32.mrf.mxu0 }
 0x40f   : > { %1595 = vst.msk [vmem:[#allocation4] sm:$0xff] %vm681_vm8, %v1593_v32  ;;  %v1590_v1 = vadd.f32 %v1787_v28, %v1589_v33 }
 0x410   : > { %v1591_v34 = vpop.f32.mrf.mxu0 }
 0x411   : > { %v1594_v35 = vmax.f32 %v1590_v1, 0.0 }
 0x413   : > { %1596 = vst.msk [vmem:[#allocation4 + $0x8] sm:$0xff] %vm681_vm8, %v1594_v35 }
 0x41a   : > { %v1597_v51 = vld [vmem:[#allocation4] ss:$4 sm:$0xf]  ;;  %v1599_v36 = vld [vmem:[#allocation4 + $0x1] ss:$4 sm:$0xf] }
 0x41b   : > { %v1600_v37 = vmax.f32 %v1597_v51, %v1599_v36  ;;  %v1602_v38 = vld [vmem:[#allocation4 + $0x2] ss:$4 sm:$0xf]  ;;  %v1605_v40 = vld [vmem:[#allocation4 + $0x3] ss:$4 sm:$0xf] }
 0x41d   : > { %v1603_v39 = vmax.f32 %v1600_v37, %v1602_v38 }
 0x41f   : > { %v1606_v41 = vmax.f32 %v1603_v39, %v1605_v40 }
 0x421   : > { %1848 = vmatmul.mubr.msk.f32.vlgmr.msra.gmra.mxu0 %vm681_vm8, %v1606_v41 }
 0x4e1   : > { %v1687_v43 = vpop.f32.mrf.mxu0 }
 0x4e2   : > { %v1688_v45 = vadd.f32 %v1790_v42, %v1687_v43 }
 0x4e3   : > { %v1849_v46 = vpop.f32.mrf.mxu0 }
 0x4e4   : > { %1692 = vst.msk [vmem:[%s326_s17] sm:$0xf] %vm1691_vm2, %v1688_v45 }
 0x4e5   : > { %1933 = shalt.err (!%p1930_p3)
}
 0x4e6   : > { %s1934_s25 = scalar_lea.hbm %s2629_s21, 64  ;;  %s1938_s17 = scalar_lea.hbm %s2673_s9, 128 }
 0x4e7   : > { %p1935_p4 = scmp.ne.s32.totalorder %s2629_s21, %s1934_s25  ;;  %p1939_p9 = scmp.lt.s32.totalorder %s2629_s21, %s2673_s9 }
 0x4e8   : > { %p1940_p10 = scmp.lt.s32.totalorder %s1938_s17, %s1934_s25 }
 0x4e9   : > { %p1936_p7 = pnand %p1935_p4, %p2077_p5 }
 0x4ea   : > { %p1941_p11 = por %p1940_p10, %p1939_p9 }
 0x4eb   : > { %p1937_p8 = pneg %p1936_p7 }
 0x4ed   : > { %p1942_p12 = pnand %p1941_p11, %p1937_p8 }
 0x4ef   : > { %1945 = shalt.err (!%p1942_p12)
}
 0x4f0   : > { %1850 = dma.vmem_to_hbm [thread:$0]  (%p2077_p5), %s1708_s22, 64, %s2629_s21, %s1694_s28  }
 0x4f1 PF: > { %p1856_p13 = scmp.ge.s32.totalorder %s1980_s12, 2  ;;  %s1719_s29 = sand.u32 1, %s1968_s30  }
 0x4f2   : > { %s1720_s13 = scalar_lea.sflag [#allocation6], %s1719_s29 }
 0x4f3   : > { %p1853_p0 = pnand %p1856_p13, %p2081_p6 }
 0x4f5   : > { %p1854_p1 = pneg %p1853_p0 }
 0x4f7   : > { %1963 = dma.done.wait (%p1854_p1), %s1720_s13, 64  }
 0x4f8   : > { %1965 = vsyncadd (%p1854_p1), %s1720_s13, 4294967232  ;;  %p19_p2 = scmp.ge.s32.totalorder %s2064_s15, 4   ;;  %s2686_s30 = smov %s1972_s10 }
 0x4f9   : > { %s2687_s10 = smov %s1976_s11  ;;  %s2688_s11 = smov %s2075_s18 }
 0x4fa   : > { %s2689_s12 = smov %s2064_s15  ;;  %21 = sbr.rel (!%p19_p2) target bundleno = 3 (0x3), region = 104 }
 0x4ff   :  { %1725 = vsyncpa [#allocation6], 1 }
 0x500   :  { %1727 = vsyncpa [#allocation6 + $0x1], 1 }

</bundles_post_ra>
